<compile_context>
chip_gen: v6e
topology: v6e:2x2x1
jax: 0.10.0
libtpu: 0.0.40
codegen_flags: <defaults>
</compile_context>

<pallas_src>
import math
import functools

import jax
import jax.numpy as jnp
from jax import lax
from jax.experimental import pallas as pl
from jax.experimental.pallas import tpu as pltpu


def _flash_sdpa_kernel(q_ref, kT_ref, v_ref, o_ref,
                       q_scr, m_scr, l_scr, acc_scr,
                       *, scale, kv_len, kv_tile, n_sub, matmul_dtype):
    kv = pl.program_id(2)

    @pl.when(kv == 0)
    def _init():
        # Hoist softmax scale out of the kv loop; scale in f32, cast once to the
        # matmul dtype (bf16 fast path) or keep f32 (exact path).
        q_scr[...] = (q_ref[...].astype(jnp.float32) * scale).astype(matmul_dtype)
        m_scr[...] = jnp.full_like(m_scr, -jnp.inf)
        l_scr[...] = jnp.zeros_like(l_scr)
        acc_scr[...] = jnp.zeros_like(acc_scr)

    q = q_scr[...]                                # (tq, Dk), matmul dtype
    sub = kv_tile // n_sub

    # Static unroll over kv sub-blocks: lets the MXU PV matmul of sub-block i
    # overlap the EUP exp / XLU row-max of sub-block i+1.
    for i in range(n_sub):
        kT = kT_ref[:, pl.ds(i * sub, sub)]       # (Dk, sub)  lane-dense
        vv = v_ref[pl.ds(i * sub, sub), :]        # (sub, Dv)

        # (tq, Dk) @ (Dk, sub) -> (tq, sub), f32 accumulation on the MXU.
        s = jnp.dot(q, kT, preferred_element_type=jnp.float32)

        if kv_len is not None:
            # Padded (out-of-range) keys get a large negative score -> exp ~ 0.
            col = (kv * kv_tile + i * sub
                   + lax.broadcasted_iota(jnp.int32, s.shape, 1))
            s = jnp.where(col < kv_len, s, jnp.float32(-1e30))

        # Online (flash) softmax update; all elementwise math in f32.
        m_prev = m_scr[...]
        m_new = jnp.maximum(m_prev, jnp.max(s, axis=-1, keepdims=True))
        alpha = jnp.exp(m_prev - m_new)            # rescale old partials
        p = jnp.exp(s - m_new)                     # (tq, sub) f32

        l_scr[...] = alpha * l_scr[...] + jnp.sum(p, axis=-1, keepdims=True)
        acc_scr[...] = alpha * acc_scr[...] + jnp.dot(
            p.astype(matmul_dtype), vv, preferred_element_type=jnp.float32)
        m_scr[...] = m_new

    @pl.when(kv == pl.num_programs(2) - 1)
    def _finalize():
        # approx=True -> EUP vrcp (separate VLIW slot, ~free); error ~1e-4-level.
        inv_l = pl.reciprocal(l_scr[...], approx=True)
        o_ref[...] = (acc_scr[...] * inv_l).astype(o_ref.dtype)


def _round_up(x, m):
    return -(-x // m) * m


def _vmem_capacity_bytes():
    try:
        return pltpu.get_tpu_info().vmem_capacity_bytes
    except Exception:
        return None


def scaled_dot_product_attention(q, k, v, temperature=None, mask=None, *,
                                 tq=None, tk=None, matmul_dtype=None):
    """Pallas TPU implementation of ScaledDotProductAttention.forward.

    q: (B, Lq, Dk), k: (B, Lk, Dk), v: (B, Lk, Dv) -> (B, Lq, Dv)

    matmul_dtype:
      None          -> matmuls run in the input dtype (exact reference semantics
                       for f32 inputs; bf16 inputs use the bf16 MXU path).
      jnp.bfloat16  -> bf16 fast path for f32 inputs: K/V cast in the wrapper
                       (half the kv HBM stream), f32 accumulation kept. ~1e-3
                       level absolute error vs the f32 reference.
    """
    # TODO(synk): optional boolean `mask` (masked_fill with -inf before softmax)
    # is not wired in; it would be applied additively to `s` inside the kv loop.
    assert mask is None, "mask not supported in this kernel"

    B, Lq, Dk = q.shape
    Bk, Lk, Dk2 = k.shape
    Bv, Lv, Dv = v.shape
    assert B == Bk == Bv and Dk == Dk2 and Lk == Lv

    if temperature is not None:
        scale = 1.0 / float(temperature)
    else:
        scale = 1.0 / math.sqrt(Dk)

    orig_dtype = q.dtype
    if matmul_dtype is None:
        matmul_dtype = q.dtype
    matmul_dtype = jnp.dtype(matmul_dtype)

    # Per-generation default tiles: bigger q tiles on 128 MiB VMEM parts (v5e/v6e)
    # to raise arithmetic intensity; moderate on v7x (64 MiB VMEM, 3.2 TB/s HBM).
    if tq is None or tk is None:
        vmem = _vmem_capacity_bytes()
        big_vmem = (vmem is not None) and (vmem >= (96 << 20))
        if tq is None:
            tq = 512 if big_vmem else 256
        if tk is None:
            tk = 512

    # Fixed tiles + padding (no full-dimension fallback -> no VMEM blow-up and
    # the flash pipeline is preserved for non-divisible sequence lengths).
    tq_eff = tq if Lq >= tq else _round_up(Lq, 8)
    tk_eff = tk if Lk >= tk else _round_up(Lk, 8)
    assert tq_eff % 8 == 0 and tk_eff % 8 == 0
    Lq_pad = _round_up(Lq, tq_eff)
    Lk_pad = _round_up(Lk, tk_eff)

    # Cast K/V to the matmul dtype in the wrapper (halves kv DMA bytes on the
    # bf16 fast path) and pre-transpose K so its kernel blocks are lane-dense.
    kmm = k if k.dtype == matmul_dtype else k.astype(matmul_dtype)
    vmm = v if v.dtype == matmul_dtype else v.astype(matmul_dtype)
    kT = jnp.swapaxes(kmm, 1, 2)                       # (B, Dk, Lk)

    q_in = q
    if Lq_pad != Lq:
        q_in = jnp.pad(q_in, ((0, 0), (0, Lq_pad - Lq), (0, 0)))
    if Lk_pad != Lk:
        kT = jnp.pad(kT, ((0, 0), (0, 0), (0, Lk_pad - Lk)))
        vmm = jnp.pad(vmm, ((0, 0), (0, Lk_pad - Lk), (0, 0)))
    kv_len = Lk if Lk_pad != Lk else None              # static mask switch

    # Split each kv tile into 2 sub-blocks when it stays lane-aligned (mult. of 256).
    n_sub = 2 if (tk_eff % 256 == 0) else 1

    grid = (B, Lq_pad // tq_eff, Lk_pad // tk_eff)

    kernel = functools.partial(
        _flash_sdpa_kernel, scale=scale, kv_len=kv_len, kv_tile=tk_eff,
        n_sub=n_sub, matmul_dtype=matmul_dtype)

    out = pl.pallas_call(
        kernel,
        out_shape=jax.ShapeDtypeStruct((B, Lq_pad, Dv), orig_dtype),
        grid_spec=pltpu.PrefetchScalarGridSpec(
            num_scalar_prefetch=0,
            grid=grid,
            in_specs=[
                pl.BlockSpec((pl.Squeezed(), tq_eff, Dk), lambda b, i, j: (b, i, 0)),
                pl.BlockSpec((pl.Squeezed(), Dk, tk_eff), lambda b, i, j: (b, 0, j)),
                pl.BlockSpec((pl.Squeezed(), tk_eff, Dv), lambda b, i, j: (b, j, 0)),
            ],
            out_specs=pl.BlockSpec((pl.Squeezed(), tq_eff, Dv),
                                   lambda b, i, j: (b, i, 0)),
            scratch_shapes=[
                pltpu.VMEM((tq_eff, Dk), matmul_dtype),  # scaled q (resident)
                pltpu.VMEM((tq_eff, 1), jnp.float32),    # running max m
                pltpu.VMEM((tq_eff, 1), jnp.float32),    # running sum l
                pltpu.VMEM((tq_eff, Dv), jnp.float32),   # f32 output accumulator
            ],
        ),
        compiler_params=pltpu.CompilerParams(
            # Two parallel axes (B, Lq-tiles) so both v7x TensorCores get work
            # even at small batch; the kv reduction axis is last and "arbitrary".
            dimension_semantics=("parallel", "parallel", "arbitrary"),
            vmem_limit_bytes=48 * 1024 * 1024,
        ),
    )(q_in, kT, vmm)

    if Lq_pad != Lq:
        out = out[:, :Lq, :]
    return out


def _reference_sdpa(q, k, v, temperature=None):
    attn = jnp.einsum("bqd,bkd->bqk", q, k)
    if temperature is not None:
        attn = attn / temperature
    else:
        attn = attn / math.sqrt(q.shape[2])
    attn = jax.nn.softmax(attn, axis=2)
    return jnp.einsum("bqk,bkd->bqd", attn, v)


if __name__ == "__main__":
    key = jax.random.PRNGKey(0)
    kq, kk, kv_key = jax.random.split(key, 3)

    # Case 1: f32 exact path with non-divisible lengths -> exercises q padding
    # + output slice, masked kv tail, 2 kv sub-blocks, multi q/kv tiles.
    B, Lq, Lk, Dk, Dv = 2, 192, 320, 32, 32
    q = jax.random.normal(kq, (B, Lq, Dk), dtype=jnp.float32)
    k = jax.random.normal(kk, (B, Lk, Dk), dtype=jnp.float32)
    v = jax.random.normal(kv_key, (B, Lk, Dv), dtype=jnp.float32)

    out = scaled_dot_product_attention(q, k, v, temperature=None, tq=128, tk=256)
    out = jax.block_until_ready(out)
    ref = _reference_sdpa(q, k, v, temperature=None)
    assert out.shape == (B, Lq, Dv)
    assert jnp.allclose(out, ref, atol=2e-3, rtol=2e-3), "mismatch (f32 flash path)"

    # Case 2: tiny shape from the module spec, single block, explicit temperature,
    # default (auto) tiles.
    B2, L2, D2 = 2, 8, 32
    q2 = jax.random.normal(kq, (B2, L2, D2), dtype=jnp.float32)
    k2 = jax.random.normal(kk, (B2, L2, D2), dtype=jnp.float32)
    v2 = jax.random.normal(kv_key, (B2, L2, D2), dtype=jnp.float32)
    out2 = scaled_dot_product_attention(q2, k2, v2, temperature=4.0)
    out2 = jax.block_until_ready(out2)
    ref2 = _reference_sdpa(q2, k2, v2, temperature=4.0)
    assert jnp.allclose(out2, ref2, atol=2e-3, rtol=2e-3), "mismatch (tiny path)"

    # Case 3: bf16 MXU fast path on f32 inputs (documented accuracy tradeoff).
    out3 = scaled_dot_product_attention(q, k, v, temperature=None, tq=128, tk=256,
                                        matmul_dtype=jnp.bfloat16)
    out3 = jax.block_until_ready(out3)
    assert jnp.allclose(out3, ref, atol=2e-2, rtol=2e-2), "mismatch (bf16 fast path)"

    # Case 4: native bf16 inputs -> bf16 path selected automatically, bf16 output.
    qb, kb, vb = (x.astype(jnp.bfloat16) for x in (q, k, v))
    out4 = scaled_dot_product_attention(qb, kb, vb, temperature=None, tq=128, tk=256)
    out4 = jax.block_until_ready(out4)
    assert out4.dtype == jnp.bfloat16
    ref4 = _reference_sdpa(qb.astype(jnp.float32), kb.astype(jnp.float32),
                           vb.astype(jnp.float32), temperature=None)
    assert jnp.allclose(out4.astype(jnp.float32), ref4, atol=3e-2, rtol=3e-2), \
        "mismatch (bf16 inputs)"

    print("KERNEL_OK")
</pallas_src>

<mosaic_0001>
module attributes {stable_mosaic.version = 11 : i64} {
  func.func @_flash_sdpa_kernel(%arg0: i32, %arg1: i32, %arg2: i32, %arg3: memref<1x128x32xf32, #tpu.memory_space<vmem>>, %arg4: memref<1x32x256xf32, #tpu.memory_space<vmem>>, %arg5: memref<1x256x32xf32, #tpu.memory_space<vmem>>, %arg6: memref<1x128x32xf32, #tpu.memory_space<vmem>>, %arg7: memref<128x32xf32, #tpu.memory_space<vmem>>, %arg8: memref<128x1xf32, #tpu.memory_space<vmem>>, %arg9: memref<128x1xf32, #tpu.memory_space<vmem>>, %arg10: memref<128x32xf32, #tpu.memory_space<vmem>>) attributes {dimension_semantics = [#tpu.dimension_semantics<parallel>, #tpu.dimension_semantics<parallel>, #tpu.dimension_semantics<arbitrary>], iteration_bounds = array<i64: 2, 2, 2>, scalar_prefetch = 0 : i64, scratch_operands = 4 : i64, tpu.core_type = #tpu.core_type<tc>, window_params = [{transform_indices = @transform_0, window_bounds = array<i64: 1, 128, 32>}, {transform_indices = @transform_1, window_bounds = array<i64: 1, 32, 256>}, {transform_indices = @transform_2, window_bounds = array<i64: 1, 256, 32>}, {transform_indices = @transform_3, window_bounds = array<i64: 1, 128, 32>}]} {
    %c0_i32 = arith.constant 0 : i32
    %0 = arith.cmpi eq, %arg2, %c0_i32 : i32
    %1 = arith.extui %0 : i1 to i32
    %c0_i32_0 = arith.constant 0 : i32
    %2 = arith.cmpi ne, %1, %c0_i32_0 : i32
    scf.if %2 {
      %c0_50 = arith.constant 0 : index
      %c0_51 = arith.constant 0 : index
      %c0_52 = arith.constant 0 : index
      %79 = vector.load %arg3[%c0_50, %c0_51, %c0_52] : memref<1x128x32xf32, #tpu.memory_space<vmem>>, vector<1x128x32xf32>
      %80 = vector.shape_cast %79 : vector<1x128x32xf32> to vector<128x32xf32>
      %cst_53 = arith.constant 0.176776692 : f32
      %81 = vector.broadcast %cst_53 : f32 to vector<128x32xf32>
      %82 = arith.mulf %80, %81 : vector<128x32xf32>
      %c0_54 = arith.constant 0 : index
      %c0_55 = arith.constant 0 : index
      %83 = vector.load %arg7[%c0_54, %c0_55] : memref<128x32xf32, #tpu.memory_space<vmem>>, vector<128x32xf32>
      tpu.vector_store %arg7[%c0_54, %c0_55], %82 {strides = array<i32>} : memref<128x32xf32, #tpu.memory_space<vmem>>, vector<128x32xf32>,
      %cst_56 = arith.constant 0xFF800000 : f32
      %84 = vector.broadcast %cst_56 : f32 to vector<128x1xf32>
      %c0_57 = arith.constant 0 : index
      %c0_58 = arith.constant 0 : index
      %85 = vector.load %arg8[%c0_57, %c0_58] : memref<128x1xf32, #tpu.memory_space<vmem>>, vector<128x1xf32>
      tpu.vector_store %arg8[%c0_57, %c0_58], %84 {strides = array<i32>} : memref<128x1xf32, #tpu.memory_space<vmem>>, vector<128x1xf32>,
      %cst_59 = arith.constant 0.000000e+00 : f32
      %86 = vector.broadcast %cst_59 : f32 to vector<128x1xf32>
      %c0_60 = arith.constant 0 : index
      %c0_61 = arith.constant 0 : index
      %87 = vector.load %arg9[%c0_60, %c0_61] : memref<128x1xf32, #tpu.memory_space<vmem>>, vector<128x1xf32>
      tpu.vector_store %arg9[%c0_60, %c0_61], %86 {strides = array<i32>} : memref<128x1xf32, #tpu.memory_space<vmem>>, vector<128x1xf32>,
      %cst_62 = arith.constant 0.000000e+00 : f32
      %88 = vector.broadcast %cst_62 : f32 to vector<128x32xf32>
      %c0_63 = arith.constant 0 : index
      %c0_64 = arith.constant 0 : index
      %89 = vector.load %arg10[%c0_63, %c0_64] : memref<128x32xf32, #tpu.memory_space<vmem>>, vector<128x32xf32>
      tpu.vector_store %arg10[%c0_63, %c0_64], %88 {strides = array<i32>} : memref<128x32xf32, #tpu.memory_space<vmem>>, vector<128x32xf32>,
    } else {
    }
    %c0 = arith.constant 0 : index
    %c0_1 = arith.constant 0 : index
    %3 = vector.load %arg7[%c0, %c0_1] : memref<128x32xf32, #tpu.memory_space<vmem>>, vector<128x32xf32>
    %c0_2 = arith.constant 0 : index
    %c0_3 = arith.constant 0 : index
    %c0_4 = arith.constant 0 : index
    %4 = vector.load %arg4[%c0_2, %c0_3, %c0_4] : memref<1x32x256xf32, #tpu.memory_space<vmem>>, vector<1x32x128xf32>
    %5 = vector.shape_cast %4 : vector<1x32x128xf32> to vector<32x128xf32>
    %c0_5 = arith.constant 0 : index
    %c0_6 = arith.constant 0 : index
    %c0_7 = arith.constant 0 : index
    %6 = vector.load %arg5[%c0_5, %c0_6, %c0_7] : memref<1x256x32xf32, #tpu.memory_space<vmem>>, vector<1x128x32xf32>
    %7 = vector.shape_cast %6 : vector<1x128x32xf32> to vector<128x32xf32>
    %cst = arith.constant dense<0.000000e+00> : vector<128x128xf32>
    %8 = tpu.matmul %3, %5, %cst {dimension_numbers = #tpu.dot_dimension_numbers<[1], [0], [0], [1], [0, 0, 1, 1], [], []>} : vector<128x32xf32>, vector<32x128xf32>, vector<128x128xf32> -> vector<128x128xf32>
    %c256_i32 = arith.constant 256 : i32
    %9 = arith.muli %arg2, %c256_i32 : i32
    %c0_i32_8 = arith.constant 0 : i32
    %10 = arith.addi %9, %c0_i32_8 : i32
    %11 = tpu.iota {dimensions = array<i32: 1>} : vector<128x128xi32>
    %12 = vector.broadcast %10 : i32 to vector<128x128xi32>
    %13 = arith.addi %12, %11 : vector<128x128xi32>
    %c320_i32 = arith.constant 320 : i32
    %14 = vector.broadcast %c320_i32 : i32 to vector<128x128xi32>
    %15 = arith.cmpi slt, %13, %14 : vector<128x128xi32>
    %cst_9 = arith.constant -1.000000e+30 : f32
    %16 = vector.broadcast %cst_9 : f32 to vector<128x128xf32>
    %17 = arith.select %15, %8, %16 : vector<128x128xi1>, vector<128x128xf32>
    %c0_10 = arith.constant 0 : index
    %c0_11 = arith.constant 0 : index
    %18 = vector.load %arg8[%c0_10, %c0_11] : memref<128x1xf32, #tpu.memory_space<vmem>>, vector<128x1xf32>
    %cst_12 = arith.constant dense<0xFF800000> : vector<128xf32>
    %19 = vector.multi_reduction <maximumf>, %17, %cst_12 [1] : vector<128x128xf32> to vector<128xf32>
    %20 = vector.shape_cast %19 : vector<128xf32> to vector<128x1xf32>
    %21 = arith.maximumf %18, %20 : vector<128x1xf32>
    %22 = arith.subf %18, %21 : vector<128x1xf32>
    %23 = math.exp %22 : vector<128x1xf32>
    %24 = vector.broadcast %21 : vector<128x1xf32> to vector<128x128xf32>
    %25 = arith.subf %17, %24 : vector<128x128xf32>
    %26 = math.exp %25 : vector<128x128xf32>
    %c0_13 = arith.constant 0 : index
    %c0_14 = arith.constant 0 : index
    %27 = vector.load %arg9[%c0_13, %c0_14] : memref<128x1xf32, #tpu.memory_space<vmem>>, vector<128x1xf32>
    %28 = arith.mulf %23, %27 : vector<128x1xf32>
    %cst_15 = arith.constant dense<0.000000e+00> : vector<128xf32>
    %29 = vector.multi_reduction <add>, %26, %cst_15 [1] : vector<128x128xf32> to vector<128xf32>
    %30 = vector.shape_cast %29 : vector<128xf32> to vector<128x1xf32>
    %31 = arith.addf %28, %30 : vector<128x1xf32>
    %c0_16 = arith.constant 0 : index
    %c0_17 = arith.constant 0 : index
    %32 = vector.load %arg9[%c0_16, %c0_17] : memref<128x1xf32, #tpu.memory_space<vmem>>, vector<128x1xf32>
    tpu.vector_store %arg9[%c0_16, %c0_17], %31 {strides = array<i32>} : memref<128x1xf32, #tpu.memory_space<vmem>>, vector<128x1xf32>,
    %c0_18 = arith.constant 0 : index
    %c0_19 = arith.constant 0 : index
    %33 = vector.load %arg10[%c0_18, %c0_19] : memref<128x32xf32, #tpu.memory_space<vmem>>, vector<128x32xf32>
    %34 = vector.broadcast %23 : vector<128x1xf32> to vector<128x32xf32>
    %35 = arith.mulf %34, %33 : vector<128x32xf32>
    %cst_20 = arith.constant dense<0.000000e+00> : vector<128x32xf32>
    %36 = tpu.matmul %26, %7, %cst_20 {dimension_numbers = #tpu.dot_dimension_numbers<[1], [0], [0], [1], [0, 0, 1, 1], [], []>} : vector<128x128xf32>, vector<128x32xf32>, vector<128x32xf32> -> vector<128x32xf32>
    %37 = arith.addf %35, %36 : vector<128x32xf32>
    %c0_21 = arith.constant 0 : index
    %c0_22 = arith.constant 0 : index
    %38 = vector.load %arg10[%c0_21, %c0_22] : memref<128x32xf32, #tpu.memory_space<vmem>>, vector<128x32xf32>
    tpu.vector_store %arg10[%c0_21, %c0_22], %37 {strides = array<i32>} : memref<128x32xf32, #tpu.memory_space<vmem>>, vector<128x32xf32>,
    %c0_23 = arith.constant 0 : index
    %c0_24 = arith.constant 0 : index
    %39 = vector.load %arg8[%c0_23, %c0_24] : memref<128x1xf32, #tpu.memory_space<vmem>>, vector<128x1xf32>
    tpu.vector_store %arg8[%c0_23, %c0_24], %21 {strides = array<i32>} : memref<128x1xf32, #tpu.memory_space<vmem>>, vector<128x1xf32>,
    %c0_25 = arith.constant 0 : index
    %c0_26 = arith.constant 0 : index
    %c128 = arith.constant 128 : index
    %40 = vector.load %arg4[%c0_25, %c0_26, %c128] : memref<1x32x256xf32, #tpu.memory_space<vmem>>, vector<1x32x128xf32>
    %41 = vector.shape_cast %40 : vector<1x32x128xf32> to vector<32x128xf32>
    %c0_27 = arith.constant 0 : index
    %c128_28 = arith.constant 128 : index
    %c0_29 = arith.constant 0 : index
    %42 = vector.load %arg5[%c0_27, %c128_28, %c0_29] : memref<1x256x32xf32, #tpu.memory_space<vmem>>, vector<1x128x32xf32>
    %43 = vector.shape_cast %42 : vector<1x128x32xf32> to vector<128x32xf32>
    %cst_30 = arith.constant dense<0.000000e+00> : vector<128x128xf32>
    %44 = tpu.matmul %3, %41, %cst_30 {dimension_numbers = #tpu.dot_dimension_numbers<[1], [0], [0], [1], [0, 0, 1, 1], [], []>} : vector<128x32xf32>, vector<32x128xf32>, vector<128x128xf32> -> vector<128x128xf32>
    %c256_i32_31 = arith.constant 256 : i32
    %45 = arith.muli %arg2, %c256_i32_31 : i32
    %c128_i32 = arith.constant 128 : i32
    %46 = arith.addi %45, %c128_i32 : i32
    %47 = tpu.iota {dimensions = array<i32: 1>} : vector<128x128xi32>
    %48 = vector.broadcast %46 : i32 to vector<128x128xi32>
    %49 = arith.addi %48, %47 : vector<128x128xi32>
    %c320_i32_32 = arith.constant 320 : i32
    %50 = vector.broadcast %c320_i32_32 : i32 to vector<128x128xi32>
    %51 = arith.cmpi slt, %49, %50 : vector<128x128xi32>
    %cst_33 = arith.constant -1.000000e+30 : f32
    %52 = vector.broadcast %cst_33 : f32 to vector<128x128xf32>
    %53 = arith.select %51, %44, %52 : vector<128x128xi1>, vector<128x128xf32>
    %c0_34 = arith.constant 0 : index
    %c0_35 = arith.constant 0 : index
    %54 = vector.load %arg8[%c0_34, %c0_35] : memref<128x1xf32, #tpu.memory_space<vmem>>, vector<128x1xf32>
    %cst_36 = arith.constant dense<0xFF800000> : vector<128xf32>
    %55 = vector.multi_reduction <maximumf>, %53, %cst_36 [1] : vector<128x128xf32> to vector<128xf32>
    %56 = vector.shape_cast %55 : vector<128xf32> to vector<128x1xf32>
    %57 = arith.maximumf %54, %56 : vector<128x1xf32>
    %58 = arith.subf %54, %57 : vector<128x1xf32>
    %59 = math.exp %58 : vector<128x1xf32>
    %60 = vector.broadcast %57 : vector<128x1xf32> to vector<128x128xf32>
    %61 = arith.subf %53, %60 : vector<128x128xf32>
    %62 = math.exp %61 : vector<128x128xf32>
    %c0_37 = arith.constant 0 : index
    %c0_38 = arith.constant 0 : index
    %63 = vector.load %arg9[%c0_37, %c0_38] : memref<128x1xf32, #tpu.memory_space<vmem>>, vector<128x1xf32>
    %64 = arith.mulf %59, %63 : vector<128x1xf32>
    %cst_39 = arith.constant dense<0.000000e+00> : vector<128xf32>
    %65 = vector.multi_reduction <add>, %62, %cst_39 [1] : vector<128x128xf32> to vector<128xf32>
    %66 = vector.shape_cast %65 : vector<128xf32> to vector<128x1xf32>
    %67 = arith.addf %64, %66 : vector<128x1xf32>
    %c0_40 = arith.constant 0 : index
    %c0_41 = arith.constant 0 : index
    %68 = vector.load %arg9[%c0_40, %c0_41] : memref<128x1xf32, #tpu.memory_space<vmem>>, vector<128x1xf32>
    tpu.vector_store %arg9[%c0_40, %c0_41], %67 {strides = array<i32>} : memref<128x1xf32, #tpu.memory_space<vmem>>, vector<128x1xf32>,
    %c0_42 = arith.constant 0 : index
    %c0_43 = arith.constant 0 : index
    %69 = vector.load %arg10[%c0_42, %c0_43] : memref<128x32xf32, #tpu.memory_space<vmem>>, vector<128x32xf32>
    %70 = vector.broadcast %59 : vector<128x1xf32> to vector<128x32xf32>
    %71 = arith.mulf %70, %69 : vector<128x32xf32>
    %cst_44 = arith.constant dense<0.000000e+00> : vector<128x32xf32>
    %72 = tpu.matmul %62, %43, %cst_44 {dimension_numbers = #tpu.dot_dimension_numbers<[1], [0], [0], [1], [0, 0, 1, 1], [], []>} : vector<128x128xf32>, vector<128x32xf32>, vector<128x32xf32> -> vector<128x32xf32>
    %73 = arith.addf %71, %72 : vector<128x32xf32>
    %c0_45 = arith.constant 0 : index
    %c0_46 = arith.constant 0 : index
    %74 = vector.load %arg10[%c0_45, %c0_46] : memref<128x32xf32, #tpu.memory_space<vmem>>, vector<128x32xf32>
    tpu.vector_store %arg10[%c0_45, %c0_46], %73 {strides = array<i32>} : memref<128x32xf32, #tpu.memory_space<vmem>>, vector<128x32xf32>,
    %c0_47 = arith.constant 0 : index
    %c0_48 = arith.constant 0 : index
    %75 = vector.load %arg8[%c0_47, %c0_48] : memref<128x1xf32, #tpu.memory_space<vmem>>, vector<128x1xf32>
    tpu.vector_store %arg8[%c0_47, %c0_48], %57 {strides = array<i32>} : memref<128x1xf32, #tpu.memory_space<vmem>>, vector<128x1xf32>,
    %c1_i32 = arith.constant 1 : i32
    %76 = arith.cmpi eq, %arg2, %c1_i32 : i32
    %77 = arith.extui %76 : i1 to i32
    %c0_i32_49 = arith.constant 0 : i32
    %78 = arith.cmpi ne, %77, %c0_i32_49 : i32
    scf.if %78 {
      %c0_50 = arith.constant 0 : index
      %c0_51 = arith.constant 0 : index
      %79 = vector.load %arg9[%c0_50, %c0_51] : memref<128x1xf32, #tpu.memory_space<vmem>>, vector<128x1xf32>
      %80 = tpu.reciprocal %79 {approx = true} : vector<128x1xf32> -> vector<128x1xf32>
      %c0_52 = arith.constant 0 : index
      %c0_53 = arith.constant 0 : index
      %81 = vector.load %arg10[%c0_52, %c0_53] : memref<128x32xf32, #tpu.memory_space<vmem>>, vector<128x32xf32>
      %82 = vector.broadcast %80 : vector<128x1xf32> to vector<128x32xf32>
      %83 = arith.mulf %81, %82 : vector<128x32xf32>
      %c0_54 = arith.constant 0 : index
      %c0_55 = arith.constant 0 : index
      %c0_56 = arith.constant 0 : index
      %84 = vector.load %arg6[%c0_54, %c0_55, %c0_56] : memref<1x128x32xf32, #tpu.memory_space<vmem>>, vector<1x128x32xf32>
      %85 = vector.shape_cast %84 : vector<1x128x32xf32> to vector<128x32xf32>
      %86 = vector.shape_cast %83 : vector<128x32xf32> to vector<1x128x32xf32>
      tpu.vector_store %arg6[%c0_54, %c0_55, %c0_56], %86 {strides = array<i32>} : memref<1x128x32xf32, #tpu.memory_space<vmem>>, vector<1x128x32xf32>,
    } else {
    }
    return
  }
  func.func @transform_0(%arg0: i32, %arg1: i32, %arg2: i32) -> (i32, i32, i32) {
    %c0_i32 = arith.constant 0 : i32
    %c0_i32_0 = arith.constant 0 : i32
    return %arg0, %arg1, %c0_i32 : i32, i32, i32
  }
  func.func @transform_1(%arg0: i32, %arg1: i32, %arg2: i32) -> (i32, i32, i32) {
    %c0_i32 = arith.constant 0 : i32
    %c0_i32_0 = arith.constant 0 : i32
    return %arg0, %c0_i32, %arg2 : i32, i32, i32
  }
  func.func @transform_2(%arg0: i32, %arg1: i32, %arg2: i32) -> (i32, i32, i32) {
    %c0_i32 = arith.constant 0 : i32
    %c0_i32_0 = arith.constant 0 : i32
    return %arg0, %arg2, %c0_i32 : i32, i32, i32
  }
  func.func @transform_3(%arg0: i32, %arg1: i32, %arg2: i32) -> (i32, i32, i32) {
    %c0_i32 = arith.constant 0 : i32
    %c0_i32_0 = arith.constant 0 : i32
    return %arg0, %arg1, %c0_i32 : i32, i32, i32
  }
}

</mosaic_0001>

<bundles_post_ra>
// kernel: tpu_custom_call.1
= control target key start
LH: loop header
LB: loop body
LE: loop exit
PB: predicated region body
PF: predicated region fallthrough
CT: control target
= control target key end

     0   :  { %s4448_s0 = inlined_call_operand.vmem [shape: f32[2,256,32], index: 0, kind: input, shape index: {}]   ;;  %s4449_s1 = inlined_call_operand.vmem [shape: f32[2,32,512], index: 1, kind: input, shape index: {}]   ;;  %s4450_s2 = inlined_call_operand.vmem [shape: f32[2,512,32], index: 2, kind: input, shape index: {}]   ;;  %s4451_s3 = inlined_call_operand.vmem [shape: f32[2,256,32], index: 3, kind: output, shape index: {}]  }
   0x1   :  { %4494 = sst [smem:[#allocation48_spill]] %s4449_s1 }
   0x2   :  { %s3137_s12 = smov 0   ;;  %s3139_s13 = smov 0  }
   0x3   :  { %s3141_s14 = smov 0   ;;  %s3143_s15 = smov 0  }
   0x4   :  { %s3145_s16 = smov 0   ;;  %s3147_s17 = smov 0  }
   0x5   :  { %s3149_s18 = smov 0   ;;  %s3151_s19 = smov 0  }
   0x6   :  { %s3153_s20 = smov 0  }
   0x7 LB: > { %s25_s21 = sadd.s32 1, %s3099_s17  ;;  %s28_s22 = sadd.s32 1, %s3103_s18  ;;  %s3111_s20 = sphi %s3153_s20, %s13_s20   ;;  %s3107_s19 = sphi %s3151_s19, %s4605_s19   ;;  %s3103_s18 = sphi %s3149_s18, %s4604_s18   ;;  %s3099_s17 = sphi %s3147_s17, %s4603_s17   ;;  %s3095_s16 = sphi %s3145_s16, %s4602_s16   ;;  %s3091_s15 = sphi %s3143_s15, %s4601_s15   ;;  %s3087_s14 = sphi %s3141_s14, %s4600_s14   ;;  %s3083_s13 = sphi %s3139_s13, %s4599_s13   ;;  %s3079_s12 = sphi %s3137_s12, %s4598_s12  }
   0x8   : > { %p26_p0 = scmp.ge.s32.totalorder %s25_s21, 2  ;;  %p76_p1 = scmp.ne.s32.totalorder %s3083_s13, %s3079_s12 }
   0x9   : > { %p77_p2 = scmp.eq.s32.totalorder %s3111_s20, 0  ;;  %s32_s23 = sadd.s32 1, %s3107_s19 }
   0xa   : > { %s4607_s21 = smov (%p26_p0, %s25_s21), 0  ;;  %s4609_s22 = smov (!%p26_p0, %s28_s22), %s3103_s18 }
   0xb   : > { %p30_p3 = scmp.ge.s32.totalorder %s4609_s22, 2  ;;  %p78_p4 = por %p77_p2, %p76_p1 }
   0xc   : > { %s65_s24 = ssub.s32 %s3099_s17, %s4607_s21  ;;  %s69_s27 = sadd.s32 1, %s3083_s13 }
   0xd   : > { %s4611_s22 = smov (%p30_p3, %s4609_s22), 0  ;;  %s4613_s23 = smov (!%p30_p3, %s32_s23), %s3107_s19 }
   0xe   : > { %p34_p5 = scmp.ge.s32.totalorder %s4613_s23, 2  ;;  %p2436_p7 = scmp.ge.s32.totalorder %s3111_s20, 8 }
  0x10   : > { %s4615_s23 = smov (%p34_p5, %s4613_s23), 0 }
  0x11   : > { %s64_s25 = ssub.s32 %s3107_s19, %s4615_s23  ;;  %158 = sbr.rel (%p2436_p7) target bundleno = 36 (0x24), region = 16 }
  0x12   : > { %s66_s26 = sor.u32 %s65_s24, %s64_s25 }
  0x13   : > { %p67_p6 = scmp.eq.s32.totalorder %s66_s26, 0 }
  0x15   : > { %s3202_s28 = scalar_select %p67_p6, %s3083_s13, %s69_s27  }
  0x16   : > { %174 = sbr.rel (!%p78_p4) target bundleno = 36 (0x24), region = 24  ;;  %s176_s29 = sand.u32 (%p78_p4), 1, %s3083_s13  }
  0x17   : > { %s2438_s30 = sshll.u32 (%p78_p4), %s3099_s17, 1  ;;  %s2437_s4 = sshll.u32 (%p78_p4), %s176_s29, 6 }
  0x18   : > { %s2439_s5 = sshll.u32 (%p78_p4), %s3107_s19, 4  ;;  %s4495_s1 = sld [smem:[#allocation48_spill]] (%p78_p4) }
  0x19   : > { %s181_s6 = sadd.s32 (%p78_p4), %s2439_s5, %s2438_s30  ;;  %s178_s11 = scalar_lea.vmem (%p78_p4), [#allocation6], %s2437_s4 }
  0x1a   : > { %s2440_s7 = sshll.u32 (%p78_p4), %s181_s6, 3 }
  0x1e   : > { %s183_s10 = scalar_lea.vmem %s4495_s1, %s2440_s7 }
  0x1f   : > { %v196_v0 = vld [vmem:[%s183_s10] sm:$0xff]  ;;  %v198_v1 = vld [vmem:[%s183_s10 + $0x8] sm:$0xff] }
  0x20   : > { %v200_v2 = vld [vmem:[%s183_s10 + $0x20] sm:$0xff]  ;;  %197 = vst [vmem:[%s178_s11] sm:$0xff] %v196_v0  ;;  %199 = vst [vmem:[%s178_s11 + $0x8] sm:$0xff] %v198_v1  ;;  %v202_v3 = vld [vmem:[%s183_s10 + $0x28] sm:$0xff] }
  0x21   : > { %201 = vst [vmem:[%s178_s11 + $0x10] sm:$0xff] %v200_v2  ;;  %v204_v4 = vld [vmem:[%s183_s10 + $0x40] sm:$0xff]  ;;  %v206_v5 = vld [vmem:[%s183_s10 + $0x48] sm:$0xff]  ;;  %203 = vst [vmem:[%s178_s11 + $0x18] sm:$0xff] %v202_v3 }
  0x22   : > { %205 = vst [vmem:[%s178_s11 + $0x20] sm:$0xff] %v204_v4  ;;  %207 = vst [vmem:[%s178_s11 + $0x28] sm:$0xff] %v206_v5  ;;  %v208_v6 = vld [vmem:[%s183_s10 + $0x60] sm:$0xff]  ;;  %v210_v7 = vld [vmem:[%s183_s10 + $0x68] sm:$0xff] }
  0x23   : > { %209 = vst [vmem:[%s178_s11 + $0x30] sm:$0xff] %v208_v6  ;;  %211 = vst [vmem:[%s178_s11 + $0x38] sm:$0xff] %v210_v7 }
  0x24 PF: > { %p2441_p8 = scmp.ge.s32.totalorder %s3111_s20, 1  ;;  %p229_p9 = scmp.lt.s32.totalorder %s3111_s20, 9 }
  0x26   : > { %p230_p10 = pnand %p2441_p8, %p229_p9 }
  0x28   : > { %233 = sbr.rel (%p230_p10) target bundleno = 1124 (0x464), region = 51 }
  0x2d   : > { %s236_s24 = sand.u32 1, %s3079_s12   ;;  %s2443_s25 = sshll.u32 %s3091_s15, 4 }
  0x2e   : > { %s2442_s26 = sshll.u32 %s236_s24, 6  ;;  %p282_p11 = scmp.lt.s32.totalorder %s3095_s16, 1 }
  0x2f   : > { %p284_p12 = scmp.lt.s32.totalorder %s2443_s25, 31  ;;  %s2446_s29 = sshll.u32 %s3087_s14, 5 }
  0x30   : > { %s4617_s16 = smov (!%p282_p11, %s3095_s16), 1  ;;  %p295_p13 = scmp.lt.s32.totalorder %s2446_s29, 63 }
  0x31   : > { %s4619_s25 = smov (!%p284_p12, %s2443_s25), 31  ;;  %s2444_s27 = sshll.u32 %s4617_s16, 5 }
  0x32   : > { %s287_s30 = sadd.s32 %s2444_s27, %s4619_s25  ;;  %s2447_s5 = sshll.u32 %s4617_s16, 6 }
  0x33   : > { %s2445_s4 = sshll.u32 %s287_s30, 3  ;;  %s4621_s29 = smov (!%p295_p13, %s2446_s29), 63 }
  0x34   : > { %s3221_s8 = scalar_lea.vmem %s4448_s0, %s2445_s4  ;;  %s3226_s12 = scalar_lea.vmem %s4451_s3, %s2445_s4 }
  0x35   : > { %s298_s15 = sadd.s32 %s2447_s5, %s4621_s29  ;;  %s3233_s27 = scalar_lea.vmem [#allocation6], %s2442_s26 }
  0x36   : > { %s2448_s11 = sshll.u32 %s298_s15, 3  ;;  %p2452_p0 = scmp.ne.s32.totalorder %s3087_s14, 0 }
  0x37   : > { %s3231_s25 = scalar_lea.vmem %s4450_s2, %s2448_s11 }
  0x38   : > { %315 = sbr.rel (%p2452_p0) target bundleno = 95 (0x5f), region = 59 }
  0x3d   : > { %v316_v8 = vld [vmem:[%s3221_s8] sm:$0xff]  ;;  %vm348_vm0 = vcmask 261120   ;;  %v317_v9 = vld [vmem:[%s3221_s8 + $0x8] sm:$0xff]  ;;  %v318_v10 = vld [vmem:[%s3221_s8 + $0x10] sm:$0xff]  ;;  %vm365_vm1 = vcmask 7168   ;;  %v3113_v14 = vmov -inf  }
  0x3e   : > { %v332_v11 = vmul.f32 0.17677669, %v316_v8  ;;  %v333_v12 = vmul.f32 0.17677669, %v317_v9  ;;  %v334_v13 = vmul.f32 0.17677669, %v318_v10 }
  0x3f   : > { %366 = vst.msk [vmem:[#allocation3] sm:$0xff] %vm365_vm1, %v3113_v14  ;;  %367 = vst.msk [vmem:[#allocation3 + $0x8] sm:$0xff] %vm365_vm1, %v3113_v14  ;;  %v319_v15 = vld [vmem:[%s3221_s8 + $0x18] sm:$0xff]  ;;  %v320_v16 = vld [vmem:[%s3221_s8 + $0x20] sm:$0xff]  ;;  %v3114_v21 = vmov 0.0  }
  0x40   : > { %368 = vst.msk [vmem:[#allocation3 + $0x10] sm:$0xff] %vm365_vm1, %v3113_v14  ;;  %369 = vst.msk [vmem:[#allocation3 + $0x18] sm:$0xff] %vm365_vm1, %v3113_v14  ;;  %v321_v17 = vld [vmem:[%s3221_s8 + $0x28] sm:$0xff]  ;;  %v335_v18 = vmul.f32 0.17677669, %v319_v15  ;;  %v322_v22 = vld [vmem:[%s3221_s8 + $0x30] sm:$0xff] }
  0x41   : > { %370 = vst.msk [vmem:[#allocation3 + $0x20] sm:$0xff] %vm365_vm1, %v3113_v14  ;;  %371 = vst.msk [vmem:[#allocation3 + $0x28] sm:$0xff] %vm365_vm1, %v3113_v14  ;;  %v336_v19 = vmul.f32 0.17677669, %v320_v16  ;;  %v337_v20 = vmul.f32 0.17677669, %v321_v17 }
  0x42   : > { %372 = vst.msk [vmem:[#allocation3 + $0x30] sm:$0xff] %vm365_vm1, %v3113_v14  ;;  %373 = vst.msk [vmem:[#allocation3 + $0x38] sm:$0xff] %vm365_vm1, %v3113_v14  ;;  %v323_v23 = vld [vmem:[%s3221_s8 + $0x38] sm:$0xff]  ;;  %v324_v24 = vld [vmem:[%s3221_s8 + $0x40] sm:$0xff]  ;;  %v338_v25 = vmul.f32 0.17677669, %v322_v22 }
  0x43   : > { %374 = vst.msk [vmem:[#allocation3 + $0x40] sm:$0xff] %vm365_vm1, %v3113_v14  ;;  %375 = vst.msk [vmem:[#allocation3 + $0x48] sm:$0xff] %vm365_vm1, %v3113_v14  ;;  %v339_v26 = vmul.f32 0.17677669, %v323_v23  ;;  %v340_v27 = vmul.f32 0.17677669, %v324_v24 }
  0x44   : > { %376 = vst.msk [vmem:[#allocation3 + $0x50] sm:$0xff] %vm365_vm1, %v3113_v14  ;;  %377 = vst.msk [vmem:[#allocation3 + $0x58] sm:$0xff] %vm365_vm1, %v3113_v14  ;;  %v325_v28 = vld [vmem:[%s3221_s8 + $0x48] sm:$0xff]  ;;  %v326_v29 = vld [vmem:[%s3221_s8 + $0x50] sm:$0xff] }
  0x45   : > { %378 = vst.msk [vmem:[#allocation3 + $0x60] sm:$0xff] %vm365_vm1, %v3113_v14  ;;  %379 = vst.msk [vmem:[#allocation3 + $0x68] sm:$0xff] %vm365_vm1, %v3113_v14  ;;  %v327_v30 = vld [vmem:[%s3221_s8 + $0x58] sm:$0xff]  ;;  %v341_v31 = vmul.f32 0.17677669, %v325_v28  ;;  %v328_v34 = vld [vmem:[%s3221_s8 + $0x60] sm:$0xff] }
  0x46   : > { %380 = vst.msk [vmem:[#allocation3 + $0x70] sm:$0xff] %vm365_vm1, %v3113_v14  ;;  %381 = vst.msk [vmem:[#allocation3 + $0x78] sm:$0xff] %vm365_vm1, %v3113_v14  ;;  %v342_v32 = vmul.f32 0.17677669, %v326_v29  ;;  %v343_v33 = vmul.f32 0.17677669, %v327_v30 }
  0x47   : > { %349 = vst.msk [vmem:[#allocation2] sm:$0xff] %vm348_vm0, %v332_v11  ;;  %350 = vst.msk [vmem:[#allocation2 + $0x8] sm:$0xff] %vm348_vm0, %v333_v12  ;;  %v329_v35 = vld [vmem:[%s3221_s8 + $0x68] sm:$0xff]  ;;  %v330_v36 = vld [vmem:[%s3221_s8 + $0x70] sm:$0xff]  ;;  %v344_v37 = vmul.f32 0.17677669, %v328_v34 }
  0x48   : > { %351 = vst.msk [vmem:[#allocation2 + $0x10] sm:$0xff] %vm348_vm0, %v334_v13  ;;  %398 = vst.msk [vmem:[#allocation5] sm:$0xff] %vm348_vm0, %v3114_v21  ;;  %v345_v38 = vmul.f32 0.17677669, %v329_v35  ;;  %v346_v39 = vmul.f32 0.17677669, %v330_v36 }
  0x49   : > { %382 = vst.msk [vmem:[#allocation4] sm:$0xff] %vm365_vm1, %v3114_v21  ;;  %383 = vst.msk [vmem:[#allocation4 + $0x8] sm:$0xff] %vm365_vm1, %v3114_v21  ;;  %v331_v40 = vld [vmem:[%s3221_s8 + $0x78] sm:$0xff] }
  0x4a   : > { %384 = vst.msk [vmem:[#allocation4 + $0x10] sm:$0xff] %vm365_vm1, %v3114_v21  ;;  %385 = vst.msk [vmem:[#allocation4 + $0x18] sm:$0xff] %vm365_vm1, %v3114_v21  ;;  %v347_v41 = vmul.f32 0.17677669, %v331_v40 }
  0x4b   : > { %386 = vst.msk [vmem:[#allocation4 + $0x20] sm:$0xff] %vm365_vm1, %v3114_v21  ;;  %387 = vst.msk [vmem:[#allocation4 + $0x28] sm:$0xff] %vm365_vm1, %v3114_v21 }
  0x4c   : > { %388 = vst.msk [vmem:[#allocation4 + $0x30] sm:$0xff] %vm365_vm1, %v3114_v21  ;;  %389 = vst.msk [vmem:[#allocation4 + $0x38] sm:$0xff] %vm365_vm1, %v3114_v21 }
  0x4d   : > { %390 = vst.msk [vmem:[#allocation4 + $0x40] sm:$0xff] %vm365_vm1, %v3114_v21  ;;  %391 = vst.msk [vmem:[#allocation4 + $0x48] sm:$0xff] %vm365_vm1, %v3114_v21 }
  0x4e   : > { %392 = vst.msk [vmem:[#allocation4 + $0x50] sm:$0xff] %vm365_vm1, %v3114_v21  ;;  %393 = vst.msk [vmem:[#allocation4 + $0x58] sm:$0xff] %vm365_vm1, %v3114_v21 }
  0x4f   : > { %394 = vst.msk [vmem:[#allocation4 + $0x60] sm:$0xff] %vm365_vm1, %v3114_v21  ;;  %395 = vst.msk [vmem:[#allocation4 + $0x68] sm:$0xff] %vm365_vm1, %v3114_v21 }
  0x50   : > { %396 = vst.msk [vmem:[#allocation4 + $0x70] sm:$0xff] %vm365_vm1, %v3114_v21  ;;  %397 = vst.msk [vmem:[#allocation4 + $0x78] sm:$0xff] %vm365_vm1, %v3114_v21 }
  0x51   : > { %399 = vst.msk [vmem:[#allocation5 + $0x8] sm:$0xff] %vm348_vm0, %v3114_v21  ;;  %400 = vst.msk [vmem:[#allocation5 + $0x10] sm:$0xff] %vm348_vm0, %v3114_v21 }
  0x52   : > { %401 = vst.msk [vmem:[#allocation5 + $0x18] sm:$0xff] %vm348_vm0, %v3114_v21  ;;  %402 = vst.msk [vmem:[#allocation5 + $0x20] sm:$0xff] %vm348_vm0, %v3114_v21 }
  0x53   : > { %403 = vst.msk [vmem:[#allocation5 + $0x28] sm:$0xff] %vm348_vm0, %v3114_v21  ;;  %404 = vst.msk [vmem:[#allocation5 + $0x30] sm:$0xff] %vm348_vm0, %v3114_v21 }
  0x54   : > { %405 = vst.msk [vmem:[#allocation5 + $0x38] sm:$0xff] %vm348_vm0, %v3114_v21  ;;  %406 = vst.msk [vmem:[#allocation5 + $0x40] sm:$0xff] %vm348_vm0, %v3114_v21 }
  0x55   : > { %407 = vst.msk [vmem:[#allocation5 + $0x48] sm:$0xff] %vm348_vm0, %v3114_v21  ;;  %408 = vst.msk [vmem:[#allocation5 + $0x50] sm:$0xff] %vm348_vm0, %v3114_v21 }
  0x56   : > { %409 = vst.msk [vmem:[#allocation5 + $0x58] sm:$0xff] %vm348_vm0, %v3114_v21  ;;  %410 = vst.msk [vmem:[#allocation5 + $0x60] sm:$0xff] %vm348_vm0, %v3114_v21 }
  0x57   : > { %411 = vst.msk [vmem:[#allocation5 + $0x68] sm:$0xff] %vm348_vm0, %v3114_v21  ;;  %412 = vst.msk [vmem:[#allocation5 + $0x70] sm:$0xff] %vm348_vm0, %v3114_v21 }
  0x58   : > { %413 = vst.msk [vmem:[#allocation5 + $0x78] sm:$0xff] %vm348_vm0, %v3114_v21  ;;  %352 = vst.msk [vmem:[#allocation2 + $0x18] sm:$0xff] %vm348_vm0, %v335_v18 }
  0x59   : > { %353 = vst.msk [vmem:[#allocation2 + $0x20] sm:$0xff] %vm348_vm0, %v336_v19  ;;  %354 = vst.msk [vmem:[#allocation2 + $0x28] sm:$0xff] %vm348_vm0, %v337_v20 }
  0x5a   : > { %355 = vst.msk [vmem:[#allocation2 + $0x30] sm:$0xff] %vm348_vm0, %v338_v25  ;;  %356 = vst.msk [vmem:[#allocation2 + $0x38] sm:$0xff] %vm348_vm0, %v339_v26 }
  0x5b   : > { %357 = vst.msk [vmem:[#allocation2 + $0x40] sm:$0xff] %vm348_vm0, %v340_v27  ;;  %358 = vst.msk [vmem:[#allocation2 + $0x48] sm:$0xff] %vm348_vm0, %v341_v31 }
  0x5c   : > { %359 = vst.msk [vmem:[#allocation2 + $0x50] sm:$0xff] %vm348_vm0, %v342_v32  ;;  %360 = vst.msk [vmem:[#allocation2 + $0x58] sm:$0xff] %vm348_vm0, %v343_v33 }
  0x5d   : > { %361 = vst.msk [vmem:[#allocation2 + $0x60] sm:$0xff] %vm348_vm0, %v344_v37  ;;  %362 = vst.msk [vmem:[#allocation2 + $0x68] sm:$0xff] %vm348_vm0, %v345_v38 }
  0x5e   : > { %363 = vst.msk [vmem:[#allocation2 + $0x70] sm:$0xff] %vm348_vm0, %v346_v39  ;;  %364 = vst.msk [vmem:[#allocation2 + $0x78] sm:$0xff] %vm348_vm0, %v347_v41 }
  0x5f PF: > { %v433_v42 = vld [vmem:[%s3233_s27 + $0x30] sm:$0xff]  ;;  %v432_v43 = vld [vmem:[%s3233_s27 + $0x20] sm:$0xff]  ;;  %vm450_vm2 = vcmask 261120   ;;  %v415_v47 = vld [vmem:[#allocation2 + $0x8] sm:$0xff]  ;;  %v645_v2 = vlaneseq  ;;  %s2469_s1 = sshll.u32 %s3087_s14, 8  ;;  %v3115_v19 = vmov 0  }
  0x60   : > { %2593 = vmatprep.subr.mxu0 %v433_v42  ;;  %v414_v44 = vld [vmem:[#allocation2] sm:$0xff]  ;;  %v431_v45 = vld [vmem:[%s3233_s27 + $0x10] sm:$0xff]  ;;  %v1311_v48 = vld [vmem:[%s3233_s27 + $0x38] sm:$0xff]  ;;  %v647_v4 = vstv %s2469_s1  ;;  %2878 = vset.pattern.permute.xlu1 %v3115_v19  ;;  %s1473_s16 = sadd.s32 128, %s2469_s1  ;;  %vm986_vm5 = vcmask 7168   ;;  %p2486_p1 = scmp.ne.s32.totalorder %s3087_s14, 1 }
  0x61   : > { %2594 = vmatpush3.msra.mxu0 %v433_v42  ;;  %2601 = vmatprep.mubr.msk.f32.mxu0 %vm450_vm2, %v414_v44  ;;  %v430_v46 = vld [vmem:[%s3233_s27] sm:$0xff]  ;;  %v416_v49 = vld [vmem:[#allocation2 + $0x10] sm:$0xff]  ;;  %v1310_v50 = vld [vmem:[%s3233_s27 + $0x28] sm:$0xff]  ;;  %v646_v3 = vand.u32 127, %v645_v2  ;;  %v1474_v31 = vstv %s1473_s16 }
  0x62   : > { %2595 = vmatprep.subr.mxu0 %v432_v43  ;;  %v417_v51 = vld [vmem:[#allocation2 + $0x18] sm:$0xff]  ;;  %v418_v53 = vld [vmem:[#allocation2 + $0x20] sm:$0xff]  ;;  %v1308_v54 = vld [vmem:[%s3233_s27 + $0x8] sm:$0xff]  ;;  %2877 = vset.pattern.permute.xlu0 %v3115_v19 }
  0x63   : > { %2596 = vmatpush3.msra.mxu0 %v432_v43  ;;  %v1309_v52 = vld [vmem:[%s3233_s27 + $0x18] sm:$0xff]  ;;  %v419_v55 = vld [vmem:[#allocation2 + $0x28] sm:$0xff]  ;;  %v420_v56 = vld [vmem:[#allocation2 + $0x30] sm:$0xff]  ;;  %v648_v5 = vadd.s32 %v647_v4, %v646_v3  ;;  %v1475_v34 = vadd.s32 %v1474_v31, %v646_v3 }
  0x64   : > { %2597 = vmatprep.subr.mxu0 %v431_v45  ;;  %v421_v57 = vld [vmem:[#allocation2 + $0x38] sm:$0xff]  ;;  %v422_v58 = vld [vmem:[#allocation2 + $0x40] sm:$0xff]  ;;  %v423_v59 = vld [vmem:[#allocation2 + $0x48] sm:$0xff] }
  0x65   : > { %2598 = vmatpush3.msra.mxu0 %v431_v45  ;;  %v424_v60 = vld [vmem:[#allocation2 + $0x50] sm:$0xff]  ;;  %v425_v61 = vld [vmem:[#allocation2 + $0x58] sm:$0xff]  ;;  %v426_v62 = vld [vmem:[#allocation2 + $0x60] sm:$0xff]  ;;  %vm649_vm3 = vcmp.lt.s32.totalorder %v648_v5, 320  ;;  %vm1476_vm4 = vcmp.lt.s32.totalorder %v1475_v34, 320 }
  0x66   : > { %2599 = vmatprep.subr.mxu0 %v430_v46  ;;  %v427_v63 = vld [vmem:[#allocation2 + $0x68] sm:$0xff]  ;;  %v428_v0 = vld [vmem:[#allocation2 + $0x70] sm:$0xff]  ;;  %v429_v1 = vld [vmem:[#allocation2 + $0x78] sm:$0xff] }
  0x67   : > { %2600 = vmatpush3.msra.mxu0 %v430_v46  ;;  %v445_v19 = vld [vmem:[%s3231_s25 + $0x58] sm:$0xff]  ;;  %v3500_v31 = vld [vmem:[#allocation3] sm:$0xff] }
  0x68   : > { %2602 = vmatmul.mubr.msk.f32.vlgmr.msra.gmra.mxu0 %vm450_vm2, %v415_v47  ;;  %2681 = vmatprep.subr.mxu0 %v1311_v48 }
  0x69   : > { %2604 = vmatprep.mubr.msk.f32.mxu0 %vm450_vm2, %v416_v49  ;;  %2682 = vmatpush3.msra.mxu0 %v1311_v48 }
  0x6a   : > { %2683 = vmatprep.subr.mxu0 %v1310_v50 }
  0x6b   : > { %2684 = vmatpush3.msra.mxu0 %v1310_v50 }
  0x6c   : > { %2605 = vmatmul.mubr.msk.f32.gmra.mxu0 %vm450_vm2, %v417_v51  ;;  %2685 = vmatprep.subr.mxu0 %v1309_v52 }
  0x6d   : > { %2607 = vmatprep.mubr.msk.f32.mxu0 %vm450_vm2, %v418_v53  ;;  %2686 = vmatpush3.msra.mxu0 %v1309_v52 }
  0x6e   : > { %2687 = vmatprep.subr.mxu0 %v1308_v54 }
  0x6f   : > { %2688 = vmatpush3.msra.mxu0 %v1308_v54 }
  0x70   : > { %2608 = vmatmul.mubr.msk.f32.gmra.mxu0 %vm450_vm2, %v419_v55 }
  0x71   : > { %2610 = vmatprep.mubr.msk.f32.mxu0 %vm450_vm2, %v420_v56 }
  0x74   : > { %2611 = vmatmul.mubr.msk.f32.gmra.mxu0 %vm450_vm2, %v421_v57 }
  0x75   : > { %2613 = vmatprep.mubr.msk.f32.mxu0 %vm450_vm2, %v422_v58 }
  0x78   : > { %2614 = vmatmul.mubr.msk.f32.gmra.mxu0 %vm450_vm2, %v423_v59 }
  0x79   : > { %2616 = vmatprep.mubr.msk.f32.mxu0 %vm450_vm2, %v424_v60 }
  0x7c   : > { %2617 = vmatmul.mubr.msk.f32.gmra.mxu0 %vm450_vm2, %v425_v61 }
  0x7d   : > { %2619 = vmatprep.mubr.msk.f32.mxu0 %vm450_vm2, %v426_v62 }
  0x80   : > { %2620 = vmatmul.mubr.msk.f32.gmra.mxu0 %vm450_vm2, %v427_v63 }
  0x81   : > { %2622 = vmatprep.mubr.msk.f32.mxu0 %vm450_vm2, %v428_v0 }
  0x84   : > { %2623 = vmatmul.mubr.msk.f32.gmra.mxu0 %vm450_vm2, %v429_v1 }
  0x85   : > { %2689 = vmatprep.mubr.msk.f32.mxu0 %vm450_vm2, %v414_v44 }
  0x88   : > { %2690 = vmatmul.mubr.msk.f32.vlgmr.msra.gmra.mxu0 %vm450_vm2, %v415_v47 }
  0x89   : > { %2692 = vmatprep.mubr.msk.f32.mxu0 %vm450_vm2, %v416_v49 }
  0x8c   : > { %2693 = vmatmul.mubr.msk.f32.gmra.mxu0 %vm450_vm2, %v417_v51 }
  0x8d   : > { %2695 = vmatprep.mubr.msk.f32.mxu0 %vm450_vm2, %v418_v53 }
  0x90   : > { %2696 = vmatmul.mubr.msk.f32.gmra.mxu0 %vm450_vm2, %v419_v55 }
  0x91   : > { %2698 = vmatprep.mubr.msk.f32.mxu0 %vm450_vm2, %v420_v56 }
  0x94   : > { %2699 = vmatmul.mubr.msk.f32.gmra.mxu0 %vm450_vm2, %v421_v57 }
  0x95   : > { %2701 = vmatprep.mubr.msk.f32.mxu0 %vm450_vm2, %v422_v58 }
  0x98   : > { %2702 = vmatmul.mubr.msk.f32.gmra.mxu0 %vm450_vm2, %v423_v59 }
  0x99   : > { %2704 = vmatprep.mubr.msk.f32.mxu0 %vm450_vm2, %v424_v60 }
  0x9c   : > { %2705 = vmatmul.mubr.msk.f32.gmra.mxu0 %vm450_vm2, %v425_v61 }
  0x9d   : > { %2707 = vmatprep.mubr.msk.f32.mxu0 %vm450_vm2, %v426_v62 }
  0xa0   : > { %2708 = vmatmul.mubr.msk.f32.gmra.mxu0 %vm450_vm2, %v427_v63 }
  0xa1   : > { %2710 = vmatprep.mubr.msk.f32.mxu0 %vm450_vm2, %v428_v0 }
  0xa4   : > { %2711 = vmatmul.mubr.msk.f32.gmra.mxu0 %vm450_vm2, %v429_v1 }
 0x128   : > { %v2603_v6 = vpop.f32.mrf.mxu0 }
 0x129   : > { %v3360_v7 = vsel %vm649_vm3, %v2603_v6, -1e+30 }
 0x12a   : > { %684 = vmax.xlane.f32.xlu0 %v3360_v7  ;;  %v565_v8 = vpop.f32.mrf.mxu0 }
 0x12b   : > { %v3364_v10 = vsel %vm649_vm3, %v565_v8, -1e+30 }
 0x12c   : > { %v2606_v9 = vpop.f32.mrf.mxu0 }
 0x12d   : > { %v3367_v11 = vsel %vm649_vm3, %v2606_v9, -1e+30 }
 0x12e   : > { %682 = vmax.xlane.f32.xlu0 %v3364_v10  ;;  %688 = vmax.xlane.f32.xlu1 %v3367_v11  ;;  %v575_v12 = vpop.f32.mrf.mxu0 }
 0x12f   : > { %v3372_v13 = vsel %vm649_vm3, %v575_v12, -1e+30  ;;  %v449_v12 = vld [vmem:[%s3231_s25 + $0x78] sm:$0xff] }
 0x130   : > { %v2609_v14 = vpop.f32.mrf.mxu0  ;;  %2625 = vmatprep.subr.mxu1 %v449_v12 }
 0x131   : > { %v3379_v17 = vsel %vm649_vm3, %v2609_v14, -1e+30  ;;  %v448_v14 = vld [vmem:[%s3231_s25 + $0x70] sm:$0xff]  ;;  %2626 = vmatpush3.msra.mxu1 %v449_v12 }
 0x132   : > { %686 = vmax.xlane.f32.xlu1 %v3372_v13  ;;  %v585_v15 = vpop.f32.mrf.mxu0  ;;  %2627 = vmatprep.subr.mxu1 %v448_v14 }
 0x133   : > { %v3376_v16 = vsel %vm649_vm3, %v585_v15, -1e+30  ;;  %2628 = vmatpush3.msra.mxu1 %v448_v14  ;;  %v447_v15 = vld [vmem:[%s3231_s25 + $0x68] sm:$0xff] }
 0x134   : > { %690 = vmax.xlane.f32.xlu0 %v3376_v16  ;;  %v2612_v18 = vpop.f32.mrf.mxu0  ;;  %2629 = vmatprep.subr.mxu1 %v447_v15 }
 0x135   : > { %v3387_v22 = vsel %vm649_vm3, %v2612_v18, -1e+30  ;;  %v446_v18 = vld [vmem:[%s3231_s25 + $0x60] sm:$0xff]  ;;  %2630 = vmatpush3.msra.mxu1 %v447_v15  ;;  %v3550_v15 = vld [vmem:[#allocation3 + $0x38] sm:$0xff] }
 0x136   : > { %692 = vmax.xlane.f32.xlu1 %v3379_v17  ;;  %v595_v20 = vpop.f32.mrf.mxu0  ;;  %2631 = vmatprep.subr.mxu1 %v446_v18 }
 0x137   : > { %v3384_v21 = vsel %vm649_vm3, %v595_v20, -1e+30  ;;  %2632 = vmatpush3.msra.mxu1 %v446_v18  ;;  %v3493_v20 = vld [vmem:[#allocation3 + $0x8] sm:$0xff]  ;;  %v437_v18 = vld [vmem:[%s3231_s25 + $0x18] sm:$0xff] }
 0x138   : > { %694 = vmax.xlane.f32.xlu0 %v3384_v21  ;;  %v2615_v23 = vpop.f32.mrf.mxu0  ;;  %2633 = vmatprep.subr.mxu1 %v445_v19 }
 0x139   : > { %v3395_v26 = vsel %vm649_vm3, %v2615_v23, -1e+30  ;;  %2634 = vmatpush3.msra.mxu1 %v445_v19  ;;  %v444_v23 = vld [vmem:[%s3231_s25 + $0x50] sm:$0xff]  ;;  %v3605_v19 = vld [vmem:[#allocation3 + $0x68] sm:$0xff] }
 0x13a   : > { %v605_v24 = vpop.f32.mrf.mxu0  ;;  %696 = vmax.xlane.f32.xlu1 %v3387_v22  ;;  %4496 = vst [vmem:[#allocation7_spill] sm:$0xff] %v3395_v26  ;;  %2635 = vmatprep.subr.mxu1 %v444_v23  ;;  %4520 = vst [vmem:[#allocation31_spill] sm:$0xff] %v3605_v19 }
 0x13b   : > { %v3392_v25 = vsel %vm649_vm3, %v605_v24, -1e+30  ;;  %2636 = vmatpush3.msra.mxu1 %v444_v23 }
 0x13c   : > { %698 = vmax.xlane.f32.xlu0 %v3392_v25  ;;  %v2618_v27 = vpop.f32.mrf.mxu0 }
 0x13d   : > { %v3405_v30 = vsel %vm649_vm3, %v2618_v27, -1e+30 }
 0x13e   : > { %v615_v28 = vpop.f32.mrf.mxu0  ;;  %700 = vmax.xlane.f32.xlu1 %v3395_v26  ;;  %4497 = vst [vmem:[#allocation8_spill] sm:$0xff] %v3405_v30 }
 0x13f   : > { %v3402_v29 = vsel %vm649_vm3, %v615_v28, -1e+30  ;;  %v443_v28 = vld [vmem:[%s3231_s25 + $0x48] sm:$0xff] }
 0x140   : > { %702 = vmax.xlane.f32.xlu0 %v3402_v29  ;;  %v2621_v32 = vpop.f32.mrf.mxu0  ;;  %2637 = vmatprep.subr.mxu1 %v443_v28 }
 0x141   : > { %v3413_v36 = vsel %vm649_vm3, %v2621_v32, -1e+30  ;;  %v3502_v32 = vld [vmem:[#allocation3 + $0x18] sm:$0xff]  ;;  %2638 = vmatpush3.msra.mxu1 %v443_v28 }
 0x142   : > { %v625_v33 = vpop.f32.mrf.mxu0  ;;  %704 = vmax.xlane.f32.xlu1 %v3405_v30  ;;  %4499 = vst [vmem:[#allocation10_spill] sm:$0xff] %v3413_v36 }
 0x143   : > { %v3410_v35 = vsel %vm649_vm3, %v625_v33, -1e+30 }
 0x144   : > { %4498 = vst [vmem:[#allocation9_spill] sm:$0xff] %v3410_v35  ;;  %706 = vmax.xlane.f32.xlu0 %v3410_v35  ;;  %v2624_v37 = vpop.f32.mrf.mxu0 }
 0x145   : > { %v3421_v40 = vsel %vm649_vm3, %v2624_v37, -1e+30 }
 0x146   : > { %v635_v38 = vpop.f32.mrf.mxu0  ;;  %708 = vmax.xlane.f32.xlu1 %v3413_v36  ;;  %4501 = vst [vmem:[#allocation12_spill] sm:$0xff] %v3421_v40 }
 0x147   : > { %v3418_v39 = vsel %vm649_vm3, %v635_v38, -1e+30  ;;  %v442_v38 = vld [vmem:[%s3231_s25 + $0x40] sm:$0xff] }
 0x148   : > { %4500 = vst [vmem:[#allocation11_spill] sm:$0xff] %v3418_v39  ;;  %v2691_v41 = vpop.f32.mrf.mxu0  ;;  %710 = vmax.xlane.f32.xlu0 %v3418_v39  ;;  %2639 = vmatprep.subr.mxu1 %v442_v38 }
 0x149   : > { %v3425_v42 = vsel %vm1476_vm4, %v2691_v41, -1e+30  ;;  %2640 = vmatpush3.msra.mxu1 %v442_v38 }
 0x14a   : > { %4502 = vst [vmem:[#allocation13_spill] sm:$0xff] %v3425_v42  ;;  %v1394_v43 = vpop.f32.mrf.mxu0  ;;  %712 = vmax.xlane.f32.xlu1 %v3421_v40 }
 0x14b   : > { %v3430_v45 = vsel %vm1476_vm4, %v1394_v43, -1e+30 }
 0x14c   : > { %v2694_v44 = vpop.f32.mrf.mxu0  ;;  %1511 = vmax.xlane.f32.xlu0 %v3425_v42  ;;  %4503 = vst [vmem:[#allocation14_spill] sm:$0xff] %v3430_v45 }
 0x14d   : > { %v3434_v48 = vsel %vm1476_vm4, %v2694_v44, -1e+30  ;;  %v3516_v44 = vld [vmem:[#allocation3 + $0x10] sm:$0xff] }
 0x14e   : > { %v1404_v46 = vpop.f32.mrf.mxu0  ;;  %4504 = vst [vmem:[#allocation15_spill] sm:$0xff] %v3434_v48 }
 0x14f   : > { %v3444_v53 = vsel %vm1476_vm4, %v1404_v46, -1e+30  ;;  %v441_v46 = vld [vmem:[%s3231_s25 + $0x38] sm:$0xff] }
 0x150   : > { %v2697_v47 = vpop.f32.mrf.mxu0  ;;  %1509 = vmax.xlane.f32.xlu0 %v3430_v45  ;;  %4507 = vst [vmem:[#allocation18_spill] sm:$0xff] %v3444_v53  ;;  %2641 = vmatprep.subr.mxu1 %v441_v46 }
 0x151   : > { %v3437_v49 = vsel %vm1476_vm4, %v2697_v47, -1e+30  ;;  %2642 = vmatpush3.msra.mxu1 %v441_v46  ;;  %v3569_v46 = vld [vmem:[#allocation3 + $0x48] sm:$0xff] }
 0x152   : > { %4505 = vst [vmem:[#allocation16_spill] sm:$0xff] %v3437_v49  ;;  %v1414_v50 = vpop.f32.mrf.mxu0 }
 0x153   : > { %v3449_v56 = vsel %vm1476_vm4, %v1414_v50, -1e+30 }
 0x154   : > { %v2700_v51 = vpop.f32.mrf.mxu0  ;;  %1515 = vmax.xlane.f32.xlu0 %v3434_v48  ;;  %4508 = vst [vmem:[#allocation19_spill] sm:$0xff] %v3449_v56 }
 0x155   : > { %v3441_v52 = vsel %vm1476_vm4, %v2700_v51, -1e+30  ;;  %v3527_v51 = vld [vmem:[#allocation3 + $0x20] sm:$0xff] }
 0x156   : > { %4506 = vst [vmem:[#allocation17_spill] sm:$0xff] %v3441_v52  ;;  %1523 = vmax.xlane.f32.xlu1 %v3441_v52  ;;  %v1424_v54 = vpop.f32.mrf.mxu0 }
 0x157   : > { %v3457_v60 = vsel %vm1476_vm4, %v1424_v54, -1e+30  ;;  %v440_v54 = vld [vmem:[%s3231_s25 + $0x30] sm:$0xff] }
 0x158   : > { %1513 = vmax.xlane.f32.xlu0 %v3444_v53  ;;  %v2703_v55 = vpop.f32.mrf.mxu0  ;;  %4510 = vst [vmem:[#allocation21_spill] sm:$0xff] %v3457_v60  ;;  %2643 = vmatprep.subr.mxu1 %v440_v54 }
 0x159   : > { %v3452_v57 = vsel %vm1476_vm4, %v2703_v55, -1e+30  ;;  %2644 = vmatpush3.msra.mxu1 %v440_v54 }
 0x15a   : > { %4509 = vst [vmem:[#allocation20_spill] sm:$0xff] %v3452_v57  ;;  %1527 = vmax.xlane.f32.xlu1 %v3452_v57  ;;  %v1434_v58 = vpop.f32.mrf.mxu0 }
 0x15b   : > { %v3468_v1 = vsel %vm1476_vm4, %v1434_v58, -1e+30 }
 0x15c   : > { %1517 = vmax.xlane.f32.xlu0 %v3449_v56  ;;  %v2706_v59 = vpop.f32.mrf.mxu0  ;;  %4513 = vst [vmem:[#allocation24_spill] sm:$0xff] %v3468_v1 }
 0x15d   : > { %v3460_v61 = vsel %vm1476_vm4, %v2706_v59, -1e+30  ;;  %v3533_v59 = vld [vmem:[#allocation3 + $0x28] sm:$0xff] }
 0x15e   : > { %4511 = vst [vmem:[#allocation22_spill] sm:$0xff] %v3460_v61  ;;  %1531 = vmax.xlane.f32.xlu1 %v3460_v61  ;;  %v1444_v62 = vpop.f32.mrf.mxu0 }
 0x15f   : > { %v3464_v63 = vsel %vm1476_vm4, %v1444_v62, -1e+30  ;;  %v439_v62 = vld [vmem:[%s3231_s25 + $0x28] sm:$0xff] }
 0x160   : > { %4512 = vst [vmem:[#allocation23_spill] sm:$0xff] %v3464_v63  ;;  %1521 = vmax.xlane.f32.xlu0 %v3457_v60  ;;  %v2709_v0 = vpop.f32.mrf.mxu0  ;;  %2645 = vmatprep.subr.mxu1 %v439_v62 }
 0x161   : > { %v3472_v3 = vsel %vm1476_vm4, %v2709_v0, -1e+30  ;;  %2646 = vmatpush3.msra.mxu1 %v439_v62  ;;  %v3580_v62 = vld [vmem:[#allocation3 + $0x50] sm:$0xff] }
 0x162   : > { %1529 = vmax.xlane.f32.xlu1 %v3464_v63  ;;  %v1454_v2 = vpop.f32.mrf.mxu0  ;;  %4514 = vst [vmem:[#allocation25_spill] sm:$0xff] %v3472_v3 }
 0x163   : > { %v3477_v5 = vsel %vm1476_vm4, %v1454_v2, -1e+30 }
 0x164   : > { %v2712_v4 = vpop.f32.mrf.mxu0  ;;  %1525 = vmax.xlane.f32.xlu0 %v3468_v1  ;;  %4515 = vst [vmem:[#allocation26_spill] sm:$0xff] %v3477_v5 }
 0x165   : > { %v3485_v9 = vsel %vm1476_vm4, %v2712_v4, -1e+30  ;;  %v3542_v4 = vld [vmem:[#allocation3 + $0x30] sm:$0xff] }
 0x166   : > { %1535 = vmax.xlane.f32.xlu1 %v3472_v3  ;;  %v1464_v6 = vpop.f32.mrf.mxu0  ;;  %4517 = vst [vmem:[#allocation28_spill] sm:$0xff] %v3485_v9 }
 0x167   : > { %v3481_v8 = vsel %vm1476_vm4, %v1464_v6, -1e+30  ;;  %v438_v6 = vld [vmem:[%s3231_s25 + $0x20] sm:$0xff] }
 0x168   : > { %4516 = vst [vmem:[#allocation27_spill] sm:$0xff] %v3481_v8  ;;  %2647 = vmatprep.subr.mxu1 %v438_v6 }
 0x169   : > { %2648 = vmatpush3.msra.mxu1 %v438_v6  ;;  %v434_v6 = vld [vmem:[%s3231_s25] sm:$0xff] }
 0x16a   : > { %1533 = vmax.xlane.f32.xlu1 %v3477_v5  ;;  %2649 = vmatprep.subr.mxu1 %v437_v18 }
 0x16b   : > { %2650 = vmatpush3.msra.mxu1 %v437_v18 }
 0x16e   : > { %1537 = vmax.xlane.f32.xlu1 %v3481_v8 }
 0x172   : > { %1539 = vmax.xlane.f32.xlu1 %v3485_v9 }
 0x1b3   : > { %v685_v24 = vpop.xlane.xlu0 %684 }
 0x1b4   : > { %v3497_v27 = vmax.f32 %v3493_v20, %v685_v24  ;;  %v3561_v24 = vld [vmem:[#allocation3 + $0x40] sm:$0xff] }
 0x1b6   : > { %1293 = vst.msk [vmem:[#allocation3 + $0x8] sm:$0xff] %vm986_vm5, %v3497_v27  ;;  %785 = vperm.xlu1 %2878, %v3497_v27  }
 0x1b7   : > { %v683_v34 = vpop.xlane.xlu0 %682  ;;  %v689_v37 = vpop.xlane.xlu1 %688 }
 0x1b8   : > { %v3511_v41 = vmax.f32 %v3500_v31, %v683_v34  ;;  %v3514_v43 = vmax.f32 %v3502_v32, %v689_v37  ;;  %v436_v34 = vld [vmem:[%s3231_s25 + $0x10] sm:$0xff] }
 0x1b9   : > { %2651 = vmatprep.subr.mxu1 %v436_v34 }
 0x1ba   : > { %1292 = vst.msk [vmem:[#allocation3] sm:$0xff] %vm986_vm5, %v3511_v41  ;;  %1295 = vst.msk [vmem:[#allocation3 + $0x18] sm:$0xff] %vm986_vm5, %v3514_v43  ;;  %795 = vperm.xlu1 %2878, %v3514_v43   ;;  %780 = vperm.xlu0 %2877, %v3511_v41   ;;  %v730_v45 = vsub.f32 %v3500_v31, %v3511_v41 }
 0x1bb   : > { %v687_v50 = vpop.xlane.xlu1 %686  ;;  %2652 = vmatpush3.msra.mxu1 %v436_v34  ;;  %v3615_v34 = vld [vmem:[#allocation3 + $0x70] sm:$0xff] }
 0x1bc   : > { %v3531_v55 = vmax.f32 %v3516_v44, %v687_v50  ;;  %v435_v50 = vld [vmem:[%s3231_s25 + $0x8] sm:$0xff]  ;;  %v746_v41 = vmul.f32 1.442695, %v730_v45 }
 0x1bd   : > { %v691_v58 = vpop.xlane.xlu0 %690  ;;  %2653 = vmatprep.subr.mxu1 %v435_v50  ;;  %v3637_v8 = vld [vmem:[#allocation3 + $0x8] sm:$0xff] }
 0x1be   : > { %1294 = vst.msk [vmem:[#allocation3 + $0x10] sm:$0xff] %vm986_vm5, %v3531_v55  ;;  %v3539_v0 = vmax.f32 %v3527_v51, %v691_v58  ;;  %790 = vperm.xlu1 %2878, %v3531_v55   ;;  %2654 = vmatpush3.msra.mxu1 %v435_v50  ;;  %v3598_v58 = vld [vmem:[#allocation3 + $0x60] sm:$0xff]  ;;  %2879 = vpow2.f32 %v746_v41  ;;  %v732_v30 = vsub.f32 %v3516_v44, %v3531_v55 }
 0x1bf   : > { %v693_v2 = vpop.xlane.xlu1 %692  ;;  %2655 = vmatprep.subr.mxu1 %v434_v6  ;;  %v3779_v55 = vld [vmem:[%s3231_s25 + $0xe0] sm:$0xff] }
 0x1c0   : > { %1296 = vst.msk [vmem:[#allocation3 + $0x20] sm:$0xff] %vm986_vm5, %v3539_v0  ;;  %v3548_v12 = vmax.f32 %v3533_v59, %v693_v2  ;;  %2656 = vmatpush3.msra.mxu1 %v434_v6 }
 0x1c1   : > { %v695_v14 = vpop.xlane.xlu0 %694 }
 0x1c2   : > { %1297 = vst.msk [vmem:[#allocation3 + $0x28] sm:$0xff] %vm986_vm5, %v3548_v12  ;;  %v3558_v23 = vmax.f32 %v3542_v4, %v695_v14  ;;  %805 = vperm.xlu1 %2878, %v3548_v12  }
 0x1c3   : > { %v697_v28 = vpop.xlane.xlu1 %696 }
 0x1c4   : > { %1298 = vst.msk [vmem:[#allocation3 + $0x30] sm:$0xff] %vm986_vm5, %v3558_v23  ;;  %v3567_v37 = vmax.f32 %v3550_v15, %v697_v28  ;;  %v3588_v28 = vld [vmem:[#allocation3 + $0x58] sm:$0xff] }
 0x1c5   : > { %v699_v38 = vpop.xlane.xlu0 %698  ;;  %4518 = vst [vmem:[#allocation29_spill] sm:$0xff] %v3588_v28  ;;  %v3668_v63 = vld [vmem:[#allocation3 + $0x10] sm:$0xff] }
 0x1c6   : > { %v3573_v54 = vmax.f32 %v3561_v24, %v699_v38  ;;  %800 = vperm.xlu1 %2878, %v3539_v0   ;;  %1299 = vst.msk [vmem:[#allocation3 + $0x38] sm:$0xff] %vm986_vm5, %v3567_v37 }
 0x1c7   : > { %v701_v2 = vpop.xlane.xlu1 %700  ;;  %v3689_v40 = vld [vmem:[#allocation3 + $0x20] sm:$0xff] }
 0x1c8   : > { %1300 = vst.msk [vmem:[#allocation3 + $0x40] sm:$0xff] %vm986_vm5, %v3573_v54  ;;  %v3586_v14 = vmax.f32 %v3569_v46, %v701_v2 }
 0x1c9   : > { %v703_v18 = vpop.xlane.xlu0 %702 }
 0x1ca   : > { %v3591_v38 = vmax.f32 %v3580_v62, %v703_v18  ;;  %815 = vperm.xlu1 %2878, %v3567_v37   ;;  %1301 = vst.msk [vmem:[#allocation3 + $0x48] sm:$0xff] %vm986_vm5, %v3586_v14 }
 0x1cb   : > { %v705_v2 = vpop.xlane.xlu1 %704  ;;  %v3772_v35 = vpop.eup %2879 }
 0x1cc   : > { %1302 = vst.msk [vmem:[#allocation3 + $0x50] sm:$0xff] %vm986_vm5, %v3591_v38  ;;  %v3603_v50 = vmax.f32 %v3588_v28, %v705_v2  ;;  %4532 = vst [vmem:[#allocation43_spill] sm:$0xff] %v3772_v35  ;;  %v736_v28 = vsub.f32 %v3542_v4, %v3558_v23  ;;  %v3823_v4 = vld [vmem:[%s3231_s25 + $0xc0] sm:$0xff] }
 0x1cd   : > { %v707_v18 = vpop.xlane.xlu0 %706  ;;  %v3662_v1 = vld [vmem:[#allocation3 + $0x38] sm:$0xff] }
 0x1ce   : > { %4519 = vst [vmem:[#allocation30_spill] sm:$0xff] %v3603_v50  ;;  %v3608_v47 = vmax.f32 %v3598_v58, %v707_v18  ;;  %810 = vperm.xlu1 %2878, %v3558_v23   ;;  %1303 = vst.msk [vmem:[#allocation3 + $0x58] sm:$0xff] %vm986_vm5, %v3603_v50  ;;  %v3622_v18 = vld [vmem:[#allocation3 + $0x78] sm:$0xff]  ;;  %v758_v23 = vmul.f32 1.442695, %v736_v28 }
 0x1cf   : > { %v709_v33 = vpop.xlane.xlu1 %708  ;;  %4521 = vst [vmem:[#allocation32_spill] sm:$0xff] %v3622_v18  ;;  %4524 = vst [vmem:[#allocation35_spill] sm:$0xff] %v3662_v1 }
 0x1d0   : > { %1304 = vst.msk [vmem:[#allocation3 + $0x60] sm:$0xff] %vm986_vm5, %v3608_v47  ;;  %v3620_v2 = vmax.f32 %v3605_v19, %v709_v33  ;;  %v3769_v19 = vld [vmem:[%s3231_s25 + $0xe8] sm:$0xff] }
 0x1d1   : > { %v711_v56 = vpop.xlane.xlu0 %710 }
 0x1d2   : > { %v3625_v9 = vmax.f32 %v3615_v34, %v711_v56  ;;  %820 = vperm.xlu1 %2878, %v3573_v54   ;;  %1305 = vst.msk [vmem:[#allocation3 + $0x68] sm:$0xff] %vm986_vm5, %v3620_v2 }
 0x1d3   : > { %v713_v48 = vpop.xlane.xlu1 %712  ;;  %v3712_v36 = vld [vmem:[#allocation3 + $0x50] sm:$0xff] }
 0x1d4   : > { %1306 = vst.msk [vmem:[#allocation3 + $0x70] sm:$0xff] %vm986_vm5, %v3625_v9  ;;  %v3635_v33 = vmax.f32 %v3622_v18, %v713_v48  ;;  %v3650_v48 = vld [vmem:[#allocation3] sm:$0xff]  ;;  %v3746_v18 = vld [vmem:[%s3231_s25 + $0xf8] sm:$0xff] }
 0x1d5   : > { %v1512_v3 = vpop.xlane.xlu0 %1511  ;;  %4522 = vst [vmem:[#allocation33_spill] sm:$0xff] %v3650_v48  ;;  %v3696_v52 = vld [vmem:[#allocation3 + $0x58] sm:$0xff]  ;;  %2769 = vmatprep.subr.mxu1 %v3746_v18  ;;  %2713 = vmatprep.subr.mxu0 %v3746_v18 }
 0x1d6   : > { %v3640_v56 = vmax.f32 %v3637_v8, %v1512_v3  ;;  %830 = vperm.xlu1 %2878, %v3591_v38   ;;  %1307 = vst.msk [vmem:[#allocation3 + $0x78] sm:$0xff] %vm986_vm5, %v3635_v33  ;;  %v3656_v3 = vld [vmem:[#allocation3 + $0x18] sm:$0xff]  ;;  %4528 = vst [vmem:[#allocation39_spill] sm:$0xff] %v3696_v52  ;;  %2714 = vmatpush3.msra.mxu0 %v3746_v18 }
 0x1d7   : > { %4523 = vst [vmem:[#allocation34_spill] sm:$0xff] %v3656_v3 }
 0x1d8   : > { %2119 = vst.msk [vmem:[#allocation3 + $0x8] sm:$0xff] %vm986_vm5, %v3640_v56 }
 0x1d9   : > { %1519 = vmax.xlane.f32.xlu0 %v3437_v49  ;;  %v1510_v53 = vpop.xlane.xlu0 %1509  ;;  %v3729_v41 = vld [vmem:[#allocation3 + $0x68] sm:$0xff] }
 0x1da   : > { %v3653_v5 = vmax.f32 %v3650_v48, %v1510_v53  ;;  %840 = vperm.xlu1 %2878, %v3608_v47   ;;  %v3721_v48 = vld [vmem:[#allocation3 + $0x40] sm:$0xff]  ;;  %4530 = vst [vmem:[#allocation41_spill] sm:$0xff] %v3729_v41 }
 0x1dc   : > { %2118 = vst.msk [vmem:[#allocation3] sm:$0xff] %vm986_vm5, %v3653_v5 }
 0x1dd   : > { %v1516_v61 = vpop.xlane.xlu0 %1515 }
 0x1de   : > { %v3665_v49 = vmax.f32 %v3656_v3, %v1516_v61  ;;  %850 = vperm.xlu1 %2878, %v3625_v9   ;;  %v3679_v61 = vld [vmem:[#allocation3 + $0x48] sm:$0xff] }
 0x1df   : > { %v1524_v53 = vpop.xlane.xlu1 %1523  ;;  %4526 = vst [vmem:[#allocation37_spill] sm:$0xff] %v3679_v61 }
 0x1e0   : > { %2121 = vst.msk [vmem:[#allocation3 + $0x18] sm:$0xff] %vm986_vm5, %v3665_v49  ;;  %v3675_v6 = vmax.f32 %v3662_v1, %v1524_v53 }
 0x1e1   : > { %v1514_v42 = vpop.xlane.xlu0 %1513 }
 0x1e2   : > { %4525 = vst [vmem:[#allocation36_spill] sm:$0xff] %v3675_v6  ;;  %2125 = vst.msk [vmem:[#allocation3 + $0x38] sm:$0xff] %vm986_vm5, %v3675_v6  ;;  %v3686_v57 = vmax.f32 %v3668_v63, %v1514_v42  ;;  %1642 = vperm.xlu1 %2878, %v3675_v6   ;;  %v3705_v6 = vld [vmem:[#allocation3 + $0x30] sm:$0xff] }
 0x1e3   : > { %v1528_v53 = vpop.xlane.xlu1 %1527 }
 0x1e4   : > { %2120 = vst.msk [vmem:[#allocation3 + $0x10] sm:$0xff] %vm986_vm5, %v3686_v57  ;;  %v3694_v31 = vmax.f32 %v3679_v61, %v1528_v53 }
 0x1e5   : > { %v1518_v3 = vpop.xlane.xlu0 %1517 }
 0x1e6   : > { %4527 = vst [vmem:[#allocation38_spill] sm:$0xff] %v3694_v31  ;;  %v3699_v1 = vmax.f32 %v3689_v40, %v1518_v3  ;;  %2127 = vst.msk [vmem:[#allocation3 + $0x48] sm:$0xff] %vm986_vm5, %v3694_v31 }
 0x1e7   : > { %v1532_v60 = vpop.xlane.xlu1 %1531 }
 0x1e8   : > { %2122 = vst.msk [vmem:[#allocation3 + $0x20] sm:$0xff] %vm986_vm5, %v3699_v1  ;;  %v3710_v45 = vmax.f32 %v3696_v52, %v1532_v60 }
 0x1e9   : > { %v1522_v53 = vpop.xlane.xlu0 %1521 }
 0x1ea   : > { %4529 = vst [vmem:[#allocation40_spill] sm:$0xff] %v3710_v45  ;;  %v3715_v3 = vmax.f32 %v3705_v6, %v1522_v53  ;;  %2129 = vst.msk [vmem:[#allocation3 + $0x58] sm:$0xff] %vm986_vm5, %v3710_v45 }
 0x1eb   : > { %v1530_v61 = vpop.xlane.xlu1 %1529 }
 0x1ec   : > { %2124 = vst.msk [vmem:[#allocation3 + $0x30] sm:$0xff] %vm986_vm5, %v3715_v3  ;;  %1637 = vperm.xlu1 %2878, %v3715_v3   ;;  %v3727_v60 = vmax.f32 %v3712_v36, %v1530_v61  ;;  %v3743_v61 = vld [vmem:[#allocation3 + $0x60] sm:$0xff] }
 0x1ed   : > { %v1526_v53 = vpop.xlane.xlu0 %1525 }
 0x1ee   : > { %2128 = vst.msk [vmem:[#allocation3 + $0x50] sm:$0xff] %vm986_vm5, %v3727_v60  ;;  %v3734_v42 = vmax.f32 %v3721_v48, %v1526_v53 }
 0x1ef   : > { %825 = vperm.xlu0 %2877, %v3586_v14   ;;  %v1536_v52 = vpop.xlane.xlu1 %1535 }
 0x1f0   : > { %1652 = vperm.xlu1 %2878, %v3694_v31   ;;  %v3739_v39 = vmax.f32 %v3729_v41, %v1536_v52  ;;  %2126 = vst.msk [vmem:[#allocation3 + $0x40] sm:$0xff] %vm986_vm5, %v3734_v42  ;;  %v3756_v31 = vld [vmem:[%s3231_s25 + $0xf0] sm:$0xff] }
 0x1f1   : > { %2715 = vmatprep.subr.mxu0 %v3756_v31  ;;  %v3766_v41 = vld [vmem:[#allocation3 + $0x70] sm:$0xff] }
 0x1f2   : > { %2131 = vst.msk [vmem:[#allocation3 + $0x68] sm:$0xff] %vm986_vm5, %v3739_v39  ;;  %4531 = vst [vmem:[#allocation42_spill] sm:$0xff] %v3766_v41  ;;  %2716 = vmatpush3.msra.mxu0 %v3756_v31 }
 0x1f3   : > { %835 = vperm.xlu0 %2877, %v3603_v50   ;;  %v1534_v52 = vpop.xlane.xlu1 %1533  ;;  %2717 = vmatprep.subr.mxu0 %v3769_v19  ;;  %v3789_v50 = vld [vmem:[#allocation3 + $0x78] sm:$0xff] }
 0x1f4   : > { %1662 = vperm.xlu1 %2878, %v3710_v45   ;;  %v3763_v53 = vmax.f32 %v3743_v61, %v1534_v52  ;;  %2718 = vmatpush3.msra.mxu0 %v3769_v19  ;;  %v750_v52 = vmul.f32 1.442695, %v732_v30  ;;  %v734_v45 = vsub.f32 %v3527_v51, %v3539_v0  ;;  %v3802_v0 = vld [vmem:[%s3231_s25 + $0xd0] sm:$0xff] }
 0x1f5   : > { %2719 = vmatprep.subr.mxu0 %v3779_v55 }
 0x1f6   : > { %2130 = vst.msk [vmem:[#allocation3 + $0x60] sm:$0xff] %vm986_vm5, %v3763_v53  ;;  %2720 = vmatpush3.msra.mxu0 %v3779_v55  ;;  %2881 = vpow2.f32 %v750_v52  ;;  %v3837_v52 = vld [vmem:[%s3231_s25 + $0xb0] sm:$0xff] }
 0x1f7   : > { %1021 = vperm.xlu0 %2877, %v3772_v35   ;;  %v1538_v44 = vpop.xlane.xlu1 %1537  ;;  %v3792_v35 = vld [vmem:[%s3231_s25 + $0xd8] sm:$0xff] }
 0x1f8   : > { %1657 = vperm.xlu1 %2878, %v3727_v60   ;;  %v3786_v26 = vmax.f32 %v3766_v41, %v1538_v44  ;;  %2721 = vmatprep.subr.mxu0 %v3792_v35  ;;  %v754_v44 = vmul.f32 1.442695, %v734_v45  ;;  %v3813_v41 = vld [vmem:[%s3231_s25 + $0xc8] sm:$0xff]  ;;  %v738_v45 = vsub.f32 %v3561_v24, %v3573_v54  ;;  %v740_v24 = vsub.f32 %v3580_v62, %v3591_v38 }
 0x1f9   : > { %2722 = vmatpush3.msra.mxu0 %v3792_v35  ;;  %v3845_v54 = vld [vmem:[%s3231_s25 + $0xa8] sm:$0xff]  ;;  %v742_v62 = vsub.f32 %v3598_v58, %v3608_v47  ;;  %v744_v58 = vsub.f32 %v3615_v34, %v3625_v9 }
 0x1fa   : > { %4533 = vst [vmem:[#allocation44_spill] sm:$0xff] %v3786_v26  ;;  %2132 = vst.msk [vmem:[#allocation3 + $0x70] sm:$0xff] %vm986_vm5, %v3786_v26  ;;  %2723 = vmatprep.subr.mxu0 %v3802_v0  ;;  %2883 = vpow2.f32 %v754_v44  ;;  %v762_v28 = vmul.f32 1.442695, %v738_v45  ;;  %v3851_v44 = vld [vmem:[%s3231_s25 + $0xa0] sm:$0xff]  ;;  %v3861_v45 = vld [vmem:[%s3231_s25 + $0x98] sm:$0xff] }
 0x1fb   : > { %845 = vperm.xlu0 %2877, %v3620_v2   ;;  %v1540_v51 = vpop.xlane.xlu1 %1539  ;;  %2724 = vmatpush3.msra.mxu0 %v3802_v0  ;;  %2885 = vpow2.f32 %v758_v23  ;;  %v766_v23 = vmul.f32 1.442695, %v740_v24  ;;  %v770_v47 = vmul.f32 1.442695, %v742_v62  ;;  %v774_v9 = vmul.f32 1.442695, %v744_v58 }
 0x1fc   : > { %1672 = vperm.xlu1 %2878, %v3739_v39   ;;  %v3809_v30 = vmax.f32 %v3789_v50, %v1540_v51  ;;  %2725 = vmatprep.subr.mxu0 %v3813_v41  ;;  %v3831_v51 = vld [vmem:[%s3231_s25 + $0xb8] sm:$0xff]  ;;  %2887 = vpow2.f32 %v762_v28  ;;  %v3867_v28 = vld [vmem:[%s3231_s25 + $0x90] sm:$0xff]  ;;  %v1559_v58 = vsub.f32 %v3668_v63, %v3686_v57 }
 0x1fd   : > { %2726 = vmatpush3.msra.mxu0 %v3813_v41  ;;  %2889 = vpow2.f32 %v766_v23  ;;  %v1558_v23 = vsub.f32 %v3637_v8, %v3640_v56  ;;  %v1561_v8 = vsub.f32 %v3689_v40, %v3699_v1  ;;  %v1567_v40 = vsub.f32 %v3712_v36, %v3727_v60 }
 0x1fe   : > { %4534 = vst [vmem:[#allocation45_spill] sm:$0xff] %v3809_v30  ;;  %2133 = vst.msk [vmem:[#allocation3 + $0x78] sm:$0xff] %vm986_vm5, %v3809_v30  ;;  %2727 = vmatprep.subr.mxu0 %v3823_v4  ;;  %2891 = vpow2.f32 %v770_v47 }
 0x1ff   : > { %855 = vperm.xlu0 %2877, %v3635_v33   ;;  %2728 = vmatpush3.msra.mxu0 %v3823_v4  ;;  %2893 = vpow2.f32 %v774_v9  ;;  %v1575_v47 = vmul.f32 1.442695, %v1558_v23  ;;  %v1581_v9 = vmul.f32 1.442695, %v1561_v8 }
 0x200   : > { %1667 = vperm.xlu1 %2878, %v3763_v53   ;;  %2729 = vmatprep.subr.mxu0 %v3831_v51 }
 0x201   : > { %2730 = vmatpush3.msra.mxu0 %v3831_v51  ;;  %2895 = vpow2.f32 %v1575_v47  ;;  %v1565_v47 = vsub.f32 %v3721_v48, %v3734_v42 }
 0x202   : > { %2731 = vmatprep.subr.mxu0 %v3837_v52 }
 0x203   : > { %1612 = vperm.xlu0 %2877, %v3640_v56   ;;  %2732 = vmatpush3.msra.mxu0 %v3837_v52  ;;  %v3858_v38 = vpop.eup %2881 }
 0x204   : > { %1677 = vperm.xlu1 %2878, %v3786_v26   ;;  %2733 = vmatprep.subr.mxu0 %v3845_v54  ;;  %4535 = vst [vmem:[#allocation46_spill] sm:$0xff] %v3858_v38  ;;  %v3877_v26 = vld [vmem:[%s3231_s25 + $0x88] sm:$0xff] }
 0x205   : > { %2734 = vmatpush3.msra.mxu0 %v3845_v54 }
 0x206   : > { %2735 = vmatprep.subr.mxu0 %v3851_v44 }
 0x207   : > { %1607 = vperm.xlu0 %2877, %v3653_v5   ;;  %2736 = vmatpush3.msra.mxu0 %v3851_v44  ;;  %v3874_v24 = vpop.eup %2883 }
 0x208   : > { %1682 = vperm.xlu1 %2878, %v3809_v30   ;;  %2737 = vmatprep.subr.mxu0 %v3861_v45  ;;  %4536 = vst [vmem:[#allocation47_spill] sm:$0xff] %v3874_v24  ;;  %v3883_v30 = vld [vmem:[%s3231_s25 + $0x80] sm:$0xff]  ;;  %v3888_v34 = vpop.eup %2885 }
 0x209   : > { %2738 = vmatpush3.msra.mxu0 %v3861_v45  ;;  %v3895_v62 = vpop.eup %2887 }
 0x20a   : > { %2739 = vmatprep.subr.mxu0 %v3867_v28 }
 0x20b   : > { %1647 = vperm.xlu0 %2877, %v3734_v42   ;;  %2740 = vmatpush3.msra.mxu0 %v3867_v28 }
 0x20c   : > { %1031 = vperm.xlu1 %2878, %v3858_v38   ;;  %2741 = vmatprep.subr.mxu0 %v3877_v26  ;;  %v1577_v38 = vmul.f32 1.442695, %v1559_v58 }
 0x20d   : > { %2742 = vmatpush3.msra.mxu0 %v3877_v26 }
 0x20e   : > { %2743 = vmatprep.subr.mxu0 %v3883_v30  ;;  %2897 = vpow2.f32 %v1577_v38 }
 0x20f   : > { %1617 = vperm.xlu0 %2877, %v3686_v57   ;;  %2744 = vmatpush3.msra.mxu0 %v3883_v30  ;;  %v1563_v57 = vsub.f32 %v3705_v6, %v3715_v3  ;;  %2899 = vpow2.f32 %v1581_v9  ;;  %v1593_v6 = vmul.f32 1.442695, %v1567_v40  ;;  %v1569_v3 = vsub.f32 %v3743_v61, %v3763_v53 }
 0x210   : > { %1041 = vperm.xlu1 %2878, %v3874_v24   ;;  %v3901_v24 = vpop.eup %2889 }
 0x211   : > { %v3906_v56 = vpop.eup %2891  ;;  %v1585_v23 = vmul.f32 1.442695, %v1563_v57  ;;  %v1597_v48 = vmul.f32 1.442695, %v1569_v3 }
 0x212   : > { %v3911_v63 = vpop.eup %2893 }
 0x213   : > { %1622 = vperm.xlu0 %2877, %v3665_v49   ;;  %2901 = vpow2.f32 %v1585_v23  ;;  %v3918_v38 = vpop.eup %2895 }
 0x214   : > { %1051 = vperm.xlu1 %2878, %v3888_v34  }
 0x217   : > { %1627 = vperm.xlu0 %2877, %v3699_v1   ;;  %v1589_v1 = vmul.f32 1.442695, %v1565_v47 }
 0x218   : > { %1061 = vperm.xlu1 %2878, %v3895_v62  }
 0x219   : > { %2903 = vpow2.f32 %v1589_v1 }
 0x21a   : > { %2905 = vpow2.f32 %v1593_v6 }
 0x21b   : > { %v3923_v58 = vpop.eup %2897  ;;  %2907 = vpow2.f32 %v1597_v48 }
 0x21c   : > { %1071 = vperm.xlu1 %2878, %v3901_v24   ;;  %v3926_v42 = vpop.eup %2899 }
 0x220   : > { %1081 = vperm.xlu1 %2878, %v3906_v56   ;;  %v3929_v60 = vpop.eup %2901 }
 0x224   : > { %1091 = vperm.xlu1 %2878, %v3911_v63  }
 0x226   : > { %v3934_v57 = vpop.eup %2903 }
 0x227   : > { %v3939_v3 = vpop.eup %2905 }
 0x228   : > { %1852 = vperm.xlu1 %2878, %v3918_v38  }
 0x22c   : > { %1857 = vperm.xlu1 %2878, %v3923_v58  }
 0x230   : > { %1867 = vperm.xlu1 %2878, %v3926_v42  }
 0x231   : > { %v786_v36 = vpop.permute.xlu1 %785 }
 0x232   : > { %v859_v8 = vsub.f32 %v3360_v7, %v786_v36  ;;  %v3942_v36 = vpop.eup %2907 }
 0x234   : > { %1877 = vperm.xlu1 %2878, %v3929_v60   ;;  %v876_v23 = vmul.f32 1.442695, %v859_v8 }
 0x235   : > { %v796_v61 = vpop.permute.xlu1 %795  ;;  %v781_v53 = vpop.permute.xlu0 %780 }
 0x236   : > { %v858_v9 = vsub.f32 %v3364_v10, %v781_v53  ;;  %v861_v47 = vsub.f32 %v3367_v11, %v796_v61 }
 0x238   : > { %v874_v40 = vmul.f32 1.442695, %v858_v9  ;;  %1887 = vperm.xlu1 %2878, %v3934_v57   ;;  %v880_v7 = vmul.f32 1.442695, %v861_v47 }
 0x239   : > { %v791_v1 = vpop.permute.xlu1 %790 }
 0x23a   : > { %v860_v6 = vsub.f32 %v3372_v13, %v791_v1  ;;  %2909 = vpow2.f32 %v874_v40 }
 0x23b   : > { %2911 = vpow2.f32 %v876_v23 }
 0x23c   : > { %v878_v48 = vmul.f32 1.442695, %v860_v6  ;;  %1897 = vperm.xlu1 %2878, %v3939_v3  }
 0x23d   : > { %v806_v10 = vpop.permute.xlu1 %805 }
 0x23e   : > { %2913 = vpow2.f32 %v878_v48  ;;  %v863_v11 = vsub.f32 %v3379_v17, %v806_v10 }
 0x23f   : > { %2915 = vpow2.f32 %v880_v7 }
 0x240   : > { %1907 = vperm.xlu1 %2878, %v3942_v36   ;;  %v884_v61 = vmul.f32 1.442695, %v863_v11 }
 0x241   : > { %v801_v8 = vpop.permute.xlu1 %800 }
 0x242   : > { %v862_v13 = vsub.f32 %v3376_v16, %v801_v8 }
 0x244   : > { %v882_v53 = vmul.f32 1.442695, %v862_v13 }
 0x245   : > { %v816_v9 = vpop.permute.xlu1 %815 }
 0x246   : > { %2917 = vpow2.f32 %v882_v53  ;;  %v865_v23 = vsub.f32 %v3387_v22, %v816_v9  ;;  %v4545_v9 = vld [vmem:[#allocation7_spill] sm:$0xff] }
 0x247   : > { %2919 = vpow2.f32 %v884_v61  ;;  %v3948_v47 = vpop.eup %2909  ;;  %v4543_v61 = vld [vmem:[#allocation30_spill] sm:$0xff] }
 0x248   : > { %v3950_v40 = vpop.eup %2911  ;;  %2657 = vmatprep.mubr.f32.mxu1 %v3948_v47  ;;  %v888_v16 = vmul.f32 1.442695, %v865_v23 }
 0x249   : > { %v811_v17 = vpop.permute.xlu1 %810  ;;  %2658 = vmatmul.mubr.f32.vlgmr.msra.gmra.mxu1 %v3950_v40 }
 0x24a   : > { %v864_v1 = vsub.f32 %v3384_v21, %v811_v17  ;;  %2785 = vmatpush3.msra.mxu1 %v3746_v18  ;;  %v4546_v17 = vld [vmem:[#allocation9_spill] sm:$0xff] }
 0x24b   : > { %v3955_v6 = vpop.eup %2913  ;;  %2770 = vmatprep.subr.mxu1 %v3756_v31 }
 0x24c   : > { %v886_v7 = vmul.f32 1.442695, %v864_v1  ;;  %2660 = vmatprep.mubr.f32.mxu1 %v3955_v6  ;;  %v3960_v22 = vpop.eup %2915  ;;  %2786 = vmatpush3.msra.mxu1 %v3756_v31 }
 0x24d   : > { %v821_v48 = vpop.permute.xlu1 %820  ;;  %2661 = vmatmul.mubr.f32.gmra.mxu1 %v3960_v22  ;;  %2771 = vmatprep.subr.mxu1 %v3769_v19 }
 0x24e   : > { %2921 = vpow2.f32 %v886_v7  ;;  %v866_v21 = vsub.f32 %v3392_v25, %v821_v48  ;;  %2787 = vmatpush3.msra.mxu1 %v3769_v19  ;;  %v4537_v19 = vsub.f32 %v3493_v20, %v3497_v27  ;;  %v4547_v7 = vld [vmem:[#allocation31_spill] sm:$0xff] }
 0x24f   : > { %2923 = vpow2.f32 %v888_v16  ;;  %2772 = vmatprep.subr.mxu1 %v3779_v55 }
 0x250   : > { %v890_v18 = vmul.f32 1.442695, %v866_v21  ;;  %2788 = vmatpush3.msra.mxu1 %v3779_v55  ;;  %v748_v11 = vmul.f32 1.442695, %v4537_v19  ;;  %v4549_v21 = vld [vmem:[#allocation8_spill] sm:$0xff] }
 0x251   : > { %v3968_v10 = vpop.permute.xlu1 %830  ;;  %2773 = vmatprep.subr.mxu1 %v3792_v35 }
 0x252   : > { %2925 = vpow2.f32 %v890_v18  ;;  %2789 = vmatpush3.msra.mxu1 %v3792_v35 }
 0x253   : > { %v3972_v31 = vpop.eup %2917  ;;  %2774 = vmatprep.subr.mxu1 %v3802_v0  ;;  %2927 = vpow2.f32 %v748_v11 }
 0x254   : > { %v2920_v25 = vpop.eup %2919  ;;  %2663 = vmatprep.mubr.f32.mxu1 %v3972_v31  ;;  %2790 = vmatpush3.msra.mxu1 %v3802_v0  ;;  %v4538_v0 = vsub.f32 %v3502_v32, %v3514_v43  ;;  %v4539_v32 = vsub.f32 %v3533_v59, %v3548_v12 }
 0x255   : > { %2664 = vmatmul.mubr.f32.gmra.mxu1 %v2920_v25  ;;  %v3981_v55 = vpop.permute.xlu1 %840  ;;  %2775 = vmatprep.subr.mxu1 %v3813_v41 }
 0x256   : > { %2791 = vmatpush3.msra.mxu1 %v3813_v41  ;;  %v752_v8 = vmul.f32 1.442695, %v4538_v0  ;;  %v756_v43 = vmul.f32 1.442695, %v4539_v32  ;;  %v870_v1 = vsub.f32 %v4546_v17, %v3981_v55  ;;  %v4550_v0 = vld [vmem:[#allocation32_spill] sm:$0xff] }
 0x257   : > { %2776 = vmatprep.subr.mxu1 %v3823_v4 }
 0x258   : > { %2792 = vmatpush3.msra.mxu1 %v3823_v4  ;;  %2929 = vpow2.f32 %v752_v8  ;;  %v4008_v4 = vld [vmem:[#allocation3 + $0x28] sm:$0xff] }
 0x259   : > { %2777 = vmatprep.subr.mxu1 %v3831_v51  ;;  %v3995_v27 = vpop.permute.xlu1 %850  ;;  %2931 = vpow2.f32 %v756_v43  ;;  %v4552_v43 = vld [vmem:[#allocation11_spill] sm:$0xff] }
 0x25a   : > { %2793 = vmatpush3.msra.mxu1 %v3831_v51 }
 0x25b   : > { %v3987_v35 = vpop.eup %2921  ;;  %2778 = vmatprep.subr.mxu1 %v3837_v52 }
 0x25c   : > { %v2924_v20 = vpop.eup %2923  ;;  %2666 = vmatprep.mubr.f32.mxu1 %v3987_v35  ;;  %2794 = vmatpush3.msra.mxu1 %v3837_v52  ;;  %v4540_v52 = vsub.f32 %v3550_v15, %v3567_v37  ;;  %v4541_v15 = vsub.f32 %v3569_v46, %v3586_v14 }
 0x25d   : > { %2667 = vmatmul.mubr.f32.gmra.mxu1 %v2924_v20  ;;  %2779 = vmatprep.subr.mxu1 %v3845_v54  ;;  %v4014_v59 = vpop.permute.xlu1 %1642 }
 0x25e   : > { %2795 = vmatpush3.msra.mxu1 %v3845_v54  ;;  %v760_v13 = vmul.f32 1.442695, %v4540_v52  ;;  %v764_v37 = vmul.f32 1.442695, %v4541_v15  ;;  %v4553_v52 = vld [vmem:[#allocation33_spill] sm:$0xff] }
 0x25f   : > { %v3999_v41 = vpop.eup %2925  ;;  %2780 = vmatprep.subr.mxu1 %v3851_v44 }
 0x260   : > { %2669 = vmatprep.mubr.f32.mxu1 %v3999_v41  ;;  %2796 = vmatpush3.msra.mxu1 %v3851_v44  ;;  %2933 = vpow2.f32 %v760_v13  ;;  %v4031_v44 = vpop.eup %2927  ;;  %v4554_v13 = vsub.f32 %v4553_v52, %v3653_v5 }
 0x261   : > { %2781 = vmatprep.subr.mxu1 %v3861_v45  ;;  %2935 = vpow2.f32 %v764_v37 }
 0x262   : > { %v1520_v51 = vpop.xlane.xlu0 %1519  ;;  %2797 = vmatpush3.msra.mxu1 %v3861_v45  ;;  %v868_v45 = vsub.f32 %v3402_v29, %v3968_v10  ;;  %v1573_v15 = vmul.f32 1.442695, %v4554_v13 }
 0x263   : > { %v4017_v12 = vmax.f32 %v4008_v4, %v1520_v51  ;;  %2782 = vmatprep.subr.mxu1 %v3867_v28  ;;  %v872_v51 = vsub.f32 %v4552_v43, %v3995_v27  ;;  %v4557_v27 = vld [vmem:[#allocation34_spill] sm:$0xff]  ;;  %v4562_v43 = vld [vmem:[#allocation35_spill] sm:$0xff] }
 0x264   : > { %938 = vadd.xlane.f32.xlu1 %v3948_v47  ;;  %2798 = vmatpush3.msra.mxu1 %v3867_v28  ;;  %v4542_v28 = vld [vmem:[#allocation29_spill] sm:$0xff]  ;;  %v894_v29 = vmul.f32 1.442695, %v868_v45  ;;  %v4555_v45 = vld [vmem:[#allocation10_spill] sm:$0xff] }
 0x265   : > { %2123 = vst.msk [vmem:[#allocation3 + $0x28] sm:$0xff] %vm986_vm5, %v4017_v12  ;;  %1632 = vperm.xlu0 %2877, %v4017_v12   ;;  %2783 = vmatprep.subr.mxu1 %v3877_v26  ;;  %v4544_v46 = vsub.f32 %v4542_v28, %v4543_v61  ;;  %v902_v61 = vmul.f32 1.442695, %v872_v51  ;;  %v1562_v17 = vsub.f32 %v4008_v4, %v4017_v12  ;;  %v4563_v51 = vld [vmem:[#allocation36_spill] sm:$0xff] }
 0x266   : > { %2799 = vmatpush3.msra.mxu1 %v3877_v26  ;;  %v4046_v26 = vpop.eup %2929  ;;  %v4564_v52 = vsub.f32 %v4562_v43, %v4563_v51  ;;  %v4574_v43 = vld [vmem:[#allocation39_spill] sm:$0xff]  ;;  %v4575_v51 = vld [vmem:[#allocation40_spill] sm:$0xff] }
 0x267   : > { %v1638_v54 = vpop.permute.xlu1 %1637  ;;  %2784 = vmatprep.subr.mxu1 %v3883_v30  ;;  %v768_v14 = vmul.f32 1.442695, %v4544_v46  ;;  %v4057_v19 = vpop.eup %2931  ;;  %v4556_v46 = vld [vmem:[#allocation21_spill] sm:$0xff] }
 0x268   : > { %944 = vadd.xlane.f32.xlu1 %v3960_v22  ;;  %2800 = vmatpush3.msra.mxu1 %v3883_v30  ;;  %v4548_v22 = vsub.f32 %v4547_v7, %v3620_v2  ;;  %v4551_v2 = vsub.f32 %v4550_v0, %v3635_v33  ;;  %v4561_v0 = vld [vmem:[#allocation13_spill] sm:$0xff]  ;;  %v1587_v13 = vmul.f32 1.442695, %v4564_v52  ;;  %v4576_v52 = vsub.f32 %v4574_v43, %v4575_v51  ;;  %v4584_v43 = vld [vmem:[#allocation19_spill] sm:$0xff] }
 0x269   : > { %1026 = vperm.xlu0 %2877, %v4031_v44   ;;  %2937 = vpow2.f32 %v768_v14  ;;  %v1691_v14 = vsub.f32 %v4556_v46, %v1638_v54 }
 0x26a   : > { %v826_v53 = vpop.permute.xlu0 %825  ;;  %v772_v30 = vmul.f32 1.442695, %v4548_v22  ;;  %v776_v8 = vmul.f32 1.442695, %v4551_v2  ;;  %v4560_v22 = vld [vmem:[#allocation17_spill] sm:$0xff] }
 0x26b   : > { %v867_v23 = vsub.f32 %v4545_v9, %v826_v53  ;;  %v4044_v47 = vpop.permute.xlu1 %1652  ;;  %v4558_v9 = vsub.f32 %v4557_v27, %v3665_v49 }
 0x26c   : > { %948 = vadd.xlane.f32.xlu1 %v2920_v25  ;;  %v898_v25 = vmul.f32 1.442695, %v870_v1 }
 0x26d   : > { %v892_v16 = vmul.f32 1.442695, %v867_v23  ;;  %1036 = vperm.xlu0 %2877, %v4046_v26   ;;  %v4065_v32 = vpop.eup %2933  ;;  %v1579_v23 = vmul.f32 1.442695, %v4558_v9 }
 0x26e   : > { %v836_v48 = vpop.permute.xlu0 %835  ;;  %v4076_v28 = vpop.eup %2935 }
 0x26f   : > { %2939 = vpow2.f32 %v892_v16  ;;  %v869_v18 = vsub.f32 %v4549_v21, %v836_v48  ;;  %v4055_v10 = vpop.permute.xlu1 %1662  ;;  %v4559_v16 = vld [vmem:[#allocation12_spill] sm:$0xff]  ;;  %v1713_v48 = vmul.f32 1.442695, %v1691_v14  ;;  %v4567_v14 = vld [vmem:[#allocation23_spill] sm:$0xff] }
 0x270   : > { %952 = vadd.xlane.f32.xlu1 %v2924_v20  ;;  %2941 = vpow2.f32 %v894_v29 }
 0x271   : > { %v896_v11 = vmul.f32 1.442695, %v869_v18  ;;  %1046 = vperm.xlu0 %2877, %v4057_v19   ;;  %2943 = vpow2.f32 %v772_v30  ;;  %v1692_v30 = vsub.f32 %v4560_v22, %v4014_v59  ;;  %v1583_v18 = vmul.f32 1.442695, %v1562_v17 }
 0x272   : > { %v4060_v55 = vpop.permute.xlu0 %1021 }
 0x273   : > { %2945 = vpow2.f32 %v896_v11  ;;  %v4069_v20 = vpop.permute.xlu1 %1657  ;;  %v1715_v11 = vmul.f32 1.442695, %v1692_v30  ;;  %v4571_v30 = vld [vmem:[#allocation24_spill] sm:$0xff] }
 0x274   : > { %2947 = vpow2.f32 %v898_v25 }
 0x275   : > { %1056 = vperm.xlu0 %2877, %v4065_v32   ;;  %2949 = vpow2.f32 %v776_v8 }
 0x276   : > { %v846_v37 = vpop.permute.xlu0 %845  ;;  %2951 = vpow2.f32 %v1573_v15  ;;  %v4083_v5 = vpop.eup %2937 }
 0x277   : > { %v871_v33 = vsub.f32 %v4555_v45, %v846_v37  ;;  %v4087_v1 = vpop.permute.xlu1 %1672  ;;  %v4565_v37 = vld [vmem:[#allocation14_spill] sm:$0xff] }
 0x279   : > { %v900_v53 = vmul.f32 1.442695, %v871_v33  ;;  %1066 = vperm.xlu0 %2877, %v4076_v28  }
 0x27a   : > { %v856_v29 = vpop.permute.xlu0 %855 }
 0x27b   : > { %2953 = vpow2.f32 %v900_v53  ;;  %v873_v7 = vsub.f32 %v4559_v16, %v856_v29  ;;  %v1668_v59 = vpop.permute.xlu1 %1667  ;;  %v1695_v53 = vsub.f32 %v4567_v14, %v4069_v20  ;;  %v4569_v29 = vld [vmem:[#allocation38_spill] sm:$0xff] }
 0x27c   : > { %v2940_v54 = vpop.eup %2939  ;;  %2955 = vpow2.f32 %v902_v61  ;;  %v4566_v61 = vld [vmem:[#allocation20_spill] sm:$0xff]  ;;  %v4572_v20 = vld [vmem:[#allocation22_spill] sm:$0xff] }
 0x27d   : > { %v904_v21 = vmul.f32 1.442695, %v873_v7  ;;  %1076 = vperm.xlu0 %2877, %v4083_v5   ;;  %956 = vadd.xlane.f32.xlu1 %v2940_v54  ;;  %v4093_v49 = vpop.eup %2941  ;;  %2957 = vpow2.f32 %v1579_v23  ;;  %v1694_v46 = vsub.f32 %v4566_v61, %v4044_v47  ;;  %v4568_v23 = vld [vmem:[#allocation37_spill] sm:$0xff] }
 0x27e   : > { %2670 = vmatmul.mubr.f32.gmra.mxu1 %v2940_v54  ;;  %v1613_v4 = vpop.permute.xlu0 %1612  ;;  %v4095_v12 = vpop.eup %2943  ;;  %v4570_v17 = vsub.f32 %v4568_v23, %v4569_v29 }
 0x27f   : > { %2959 = vpow2.f32 %v904_v21  ;;  %2672 = vmatprep.mubr.f32.mxu1 %v4093_v49  ;;  %v1686_v2 = vsub.f32 %v4561_v0, %v1613_v4  ;;  %v1678_v22 = vpop.permute.xlu1 %1677  ;;  %v1719_v21 = vmul.f32 1.442695, %v1694_v46  ;;  %v1696_v4 = vsub.f32 %v4572_v20, %v4055_v10  ;;  %v4577_v10 = vld [vmem:[#allocation18_spill] sm:$0xff]  ;;  %v4578_v46 = vld [vmem:[#allocation25_spill] sm:$0xff]  ;;  %v4583_v20 = vld [vmem:[#allocation28_spill] sm:$0xff] }
 0x280   : > { %v2946_v25 = vpop.eup %2945  ;;  %2961 = vpow2.f32 %v1713_v48  ;;  %v1591_v16 = vmul.f32 1.442695, %v4570_v17  ;;  %v1698_v14 = vsub.f32 %v4578_v46, %v4087_v1  ;;  %v4582_v1 = vld [vmem:[#allocation15_spill] sm:$0xff] }
 0x281   : > { %1086 = vperm.xlu0 %2877, %v4095_v12   ;;  %960 = vadd.xlane.f32.xlu1 %v2946_v25  ;;  %v4100_v8 = vpop.eup %2947  ;;  %2963 = vpow2.f32 %v1583_v18  ;;  %v1703_v27 = vmul.f32 1.442695, %v1686_v2  ;;  %v1721_v18 = vmul.f32 1.442695, %v1695_v53  ;;  %v1723_v61 = vmul.f32 1.442695, %v1696_v4 }
 0x282   : > { %2673 = vmatmul.mubr.f32.gmra.mxu1 %v2946_v25  ;;  %v1608_v15 = vpop.permute.xlu0 %1607  ;;  %v4107_v33 = vpop.eup %2949  ;;  %2965 = vpow2.f32 %v1715_v11  ;;  %v4573_v25 = vld [vmem:[#allocation26_spill] sm:$0xff] }
 0x283   : > { %2675 = vmatprep.mubr.f32.mxu1 %v4100_v8  ;;  %v1685_v45 = vsub.f32 %v4565_v37, %v1608_v15  ;;  %2967 = vpow2.f32 %v1587_v13  ;;  %v4117_v54 = vpop.eup %2951  ;;  %v1697_v11 = vsub.f32 %v4573_v25, %v1668_v59  ;;  %v1595_v13 = vmul.f32 1.442695, %v4576_v52  ;;  %v1683_v23 = vpop.permute.xlu1 %1682 }
 0x284   : > { %v1700_v4 = vsub.f32 %v4583_v20, %v1683_v23 }
 0x285   : > { %v1701_v9 = vmul.f32 1.442695, %v1685_v45  ;;  %1096 = vperm.xlu0 %2877, %v4107_v33   ;;  %v1725_v53 = vmul.f32 1.442695, %v1697_v11 }
 0x286   : > { %v1648_v7 = vpop.permute.xlu0 %1647 }
 0x287   : > { %2969 = vpow2.f32 %v1701_v9  ;;  %v1693_v48 = vsub.f32 %v4571_v30, %v1648_v7 }
 0x288   : > { %v2954_v47 = vpop.eup %2953  ;;  %2971 = vpow2.f32 %v1703_v27  ;;  %v4579_v27 = vld [vmem:[#allocation27_spill] sm:$0xff] }
 0x289   : > { %v1717_v0 = vmul.f32 1.442695, %v1693_v48  ;;  %1847 = vperm.xlu0 %2877, %v4117_v54   ;;  %964 = vadd.xlane.f32.xlu1 %v2954_v47  ;;  %v4124_v2 = vpop.eup %2955  ;;  %2973 = vpow2.f32 %v1591_v16  ;;  %v1699_v9 = vsub.f32 %v4579_v27, %v1678_v22  ;;  %v4580_v16 = vld [vmem:[#allocation41_spill] sm:$0xff] }
 0x28a   : > { %2676 = vmatmul.mubr.f32.gmra.mxu1 %v2954_v47  ;;  %v1618_v15 = vpop.permute.xlu0 %1617  ;;  %v4129_v37 = vpop.eup %2957  ;;  %v4581_v7 = vsub.f32 %v4580_v16, %v3739_v39 }
 0x28b   : > { %2975 = vpow2.f32 %v1717_v0  ;;  %2678 = vmatprep.mubr.f32.mxu1 %v4124_v2  ;;  %v1687_v59 = vsub.f32 %v4577_v10, %v1618_v15  ;;  %v1729_v25 = vmul.f32 1.442695, %v1699_v9 }
 0x28c   : > { %v2960_v45 = vpop.eup %2959  ;;  %2977 = vpow2.f32 %v1719_v21  ;;  %v1599_v30 = vmul.f32 1.442695, %v4581_v7  ;;  %v1727_v21 = vmul.f32 1.442695, %v1698_v14 }
 0x28d   : > { %2979 = vpow2.f32 %v1721_v18  ;;  %v1705_v29 = vmul.f32 1.442695, %v1687_v59  ;;  %1862 = vperm.xlu0 %2877, %v4129_v37   ;;  %968 = vadd.xlane.f32.xlu1 %v2960_v45  ;;  %v4137_v17 = vpop.eup %2961 }
 0x28e   : > { %2981 = vpow2.f32 %v1595_v13  ;;  %2679 = vmatmul.mubr.f32.gmra.mxu1 %v2960_v45  ;;  %v1623_v48 = vpop.permute.xlu0 %1622  ;;  %v4144_v22 = vpop.eup %2963  ;;  %v1731_v13 = vmul.f32 1.442695, %v1700_v4 }
 0x28f   : > { %2983 = vpow2.f32 %v1705_v29  ;;  %2754 = vmatprep.mubr.f32.mxu1 %v4137_v17  ;;  %v1688_v47 = vsub.f32 %v4582_v1, %v1623_v48  ;;  %v4147_v18 = vpop.eup %2965 }
 0x290   : > { %2985 = vpow2.f32 %v1723_v61  ;;  %v4151_v0 = vpop.eup %2967 }
 0x291   : > { %2987 = vpow2.f32 %v1725_v53  ;;  %v1707_v11 = vmul.f32 1.442695, %v1688_v47  ;;  %1872 = vperm.xlu0 %2877, %v4144_v22   ;;  %v4168_v53 = vpop.permute.xlu1 %1031 }
 0x292   : > { %2989 = vpow2.f32 %v1599_v30  ;;  %2755 = vmatmul.mubr.f32.vlgmr.msra.gmra.mxu1 %v4147_v18  ;;  %v1628_v39 = vpop.permute.xlu0 %1627 }
 0x293   : > { %2991 = vpow2.f32 %v1707_v11  ;;  %v1689_v51 = vsub.f32 %v4584_v43, %v1628_v39 }
 0x294   : > { %v2970_v52 = vpop.eup %2969  ;;  %2993 = vpow2.f32 %v1727_v21 }
 0x295   : > { %2995 = vpow2.f32 %v1729_v25  ;;  %v1709_v15 = vmul.f32 1.442695, %v1689_v51  ;;  %1882 = vperm.xlu0 %2877, %v4151_v0   ;;  %1765 = vadd.xlane.f32.xlu1 %v2970_v52  ;;  %v2972_v10 = vpop.eup %2971  ;;  %v4182_v30 = vpop.permute.xlu1 %1041 }
 0x296   : > { %2745 = vmatprep.mubr.f32.mxu0 %v2970_v52  ;;  %v4155_v59 = vpop.eup %2973 }
 0x297   : > { %2997 = vpow2.f32 %v1709_v15  ;;  %2746 = vmatmul.mubr.f32.vlgmr.msra.gmra.mxu0 %v2972_v10 }
 0x298   : > { %v4157_v45 = vpop.eup %2975  ;;  %2999 = vpow2.f32 %v1731_v13 }
 0x299   : > { %v4159_v61 = vpop.eup %2977  ;;  %1892 = vperm.xlu0 %2877, %v4155_v59   ;;  %2757 = vmatprep.mubr.f32.mxu1 %v4157_v45  ;;  %v4192_v21 = vpop.permute.xlu1 %1051 }
 0x29a   : > { %v4163_v46 = vpop.eup %2979  ;;  %2758 = vmatmul.mubr.f32.gmra.mxu1 %v4159_v61 }
 0x29b   : > { %v4166_v14 = vpop.eup %2981  ;;  %2760 = vmatprep.mubr.f32.mxu1 %v4163_v46 }
 0x29c   : > { %v2984_v27 = vpop.eup %2983 }
 0x29d   : > { %v4171_v9 = vpop.eup %2985  ;;  %1902 = vperm.xlu0 %2877, %v4166_v14   ;;  %2748 = vmatprep.mubr.f32.mxu0 %v2984_v27  ;;  %v4194_v20 = vpop.permute.xlu1 %1061 }
 0x29e   : > { %v4174_v23 = vpop.eup %2987  ;;  %2761 = vmatmul.mubr.f32.gmra.mxu1 %v4171_v9 }
 0x29f   : > { %v4177_v29 = vpop.eup %2989  ;;  %2763 = vmatprep.mubr.f32.mxu1 %v4174_v23 }
 0x2a0   : > { %4585 = vst [vmem:[#allocation29_spill] sm:$0xff] %v4177_v29  ;;  %v2992_v16 = vpop.eup %2991 }
 0x2a1   : > { %v4180_v7 = vpop.eup %2993  ;;  %1912 = vperm.xlu0 %2877, %v4177_v29   ;;  %1771 = vadd.xlane.f32.xlu1 %v2992_v16  ;;  %v4196_v4 = vpop.permute.xlu1 %1071 }
 0x2a2   : > { %v4185_v48 = vpop.eup %2995  ;;  %2749 = vmatmul.mubr.f32.gmra.mxu0 %v2992_v16  ;;  %2764 = vmatmul.mubr.f32.gmra.mxu1 %v4180_v7 }
 0x2a3   : > { %2766 = vmatprep.mubr.f32.mxu1 %v4185_v48 }
 0x2a4   : > { %v2998_v1 = vpop.eup %2997 }
 0x2a5   : > { %v4189_v47 = vpop.eup %2999  ;;  %2751 = vmatprep.mubr.f32.mxu0 %v2998_v1  ;;  %v4198_v25 = vpop.permute.xlu1 %1081 }
 0x2a6   : > { %2767 = vmatmul.mubr.f32.gmra.mxu1 %v4189_v47 }
 0x2a9   : > { %v4200_v11 = vpop.permute.xlu1 %1091 }
 0x2ad   : > { %v4204_v39 = vpop.permute.xlu1 %1852 }
 0x2b1   : > { %v4207_v43 = vpop.permute.xlu1 %1857 }
 0x2b5   : > { %v4211_v51 = vpop.permute.xlu1 %1867 }
 0x2b6   : > { %4586 = vst [vmem:[#allocation30_spill] sm:$0xff] %v4211_v51  ;;  %v909_v51 = vld [vmem:[#allocation4 + $0x18] sm:$0xff] }
 0x2b9   : > { %v4214_v52 = vpop.permute.xlu1 %1877 }
 0x2c0   : > { %940 = vadd.xlane.f32.xlu0 %v3950_v40  ;;  %v4218_v40 = vpop.permute.xlu1 %1887 }
 0x2c4   : > { %942 = vadd.xlane.f32.xlu0 %v3955_v6  ;;  %v4221_v15 = vpop.permute.xlu1 %1897 }
 0x2c8   : > { %946 = vadd.xlane.f32.xlu0 %v3972_v31  ;;  %v4587_v31 = vld [vmem:[#allocation16_spill] sm:$0xff] }
 0x2cc   : > { %950 = vadd.xlane.f32.xlu0 %v3987_v35 }
 0x2d0   : > { %954 = vadd.xlane.f32.xlu0 %v3999_v41  ;;  %v4223_v41 = vpop.permute.xlu1 %1907 }
 0x2d4   : > { %958 = vadd.xlane.f32.xlu0 %v4093_v49  ;;  %v906_v49 = vld [vmem:[#allocation4] sm:$0xff] }
 0x2d8   : > { %962 = vadd.xlane.f32.xlu0 %v4100_v8  ;;  %v4588_v8 = vld [vmem:[#allocation43_spill] sm:$0xff] }
 0x2d9   : > { %v922_v16 = vmul.f32 %v4588_v8, %v906_v49  ;;  %v913_v49 = vld [vmem:[#allocation4 + $0x38] sm:$0xff] }
 0x2dc   : > { %966 = vadd.xlane.f32.xlu0 %v4124_v2 }
 0x2e0   : > { %1767 = vadd.xlane.f32.xlu0 %v2972_v10  ;;  %v1633_v6 = vpop.permute.xlu0 %1632  ;;  %v925_v10 = vmul.f32 %v4046_v26, %v909_v51  ;;  %v929_v26 = vmul.f32 %v4065_v32, %v913_v49 }
 0x2e1   : > { %v1690_v13 = vsub.f32 %v4587_v31, %v1633_v6  ;;  %v911_v31 = vld [vmem:[#allocation4 + $0x28] sm:$0xff] }
 0x2e3   : > { %v1711_v35 = vmul.f32 1.442695, %v1690_v13 }
 0x2e4   : > { %1769 = vadd.xlane.f32.xlu0 %v2984_v27  ;;  %v1027_v6 = vpop.permute.xlu0 %1026 }
 0x2e5   : > { %3001 = vpow2.f32 %v1711_v35 }
 0x2e8   : > { %1773 = vadd.xlane.f32.xlu0 %v2998_v1  ;;  %v1037_v8 = vpop.permute.xlu0 %1036 }
 0x2ec   : > { %1777 = vadd.xlane.f32.xlu0 %v4137_v17  ;;  %v927_v17 = vmul.f32 %v4057_v19, %v911_v31  ;;  %v1047_v19 = vpop.permute.xlu0 %1046 }
 0x2ed   : > { %v939_v2 = vpop.xlane.xlu1 %938 }
 0x2ee   : > { %v970_v29 = vadd.f32 %v939_v2, %v922_v16  ;;  %v915_v2 = vld [vmem:[#allocation4 + $0x48] sm:$0xff] }
 0x2ef   : > { %v931_v32 = vmul.f32 %v4076_v28, %v915_v2  ;;  %v1006_v28 = vld [vmem:[#allocation5 + $0x18] sm:$0xff]  ;;  %v919_v2 = vld [vmem:[#allocation4 + $0x68] sm:$0xff] }
 0x2f0   : > { %987 = vst.msk [vmem:[#allocation4] sm:$0xff] %vm986_vm5, %v970_v29  ;;  %1781 = vadd.xlane.f32.xlu0 %v4157_v45 }
 0x2f1   : > { %v945_v27 = vpop.xlane.xlu1 %944 }
 0x2f2   : > { %v3002_v1 = vpop.eup %3001  ;;  %v973_v13 = vadd.f32 %v945_v27, %v925_v10  ;;  %v4244_v10 = vpop.permute.xlu0 %1056 }
 0x2f3   : > { %1775 = vadd.xlane.f32.xlu1 %v3002_v1  ;;  %2752 = vmatmul.mubr.f32.gmra.mxu0 %v3002_v1 }
 0x2f4   : > { %990 = vst.msk [vmem:[#allocation4 + $0x18] sm:$0xff] %vm986_vm5, %v973_v13  ;;  %1785 = vadd.xlane.f32.xlu0 %v4163_v46  ;;  %v4589_v46 = vld [vmem:[#allocation45_spill] sm:$0xff]  ;;  %v917_v13 = vld [vmem:[#allocation4 + $0x58] sm:$0xff] }
 0x2f5   : > { %v949_v35 = vpop.xlane.xlu1 %948 }
 0x2f6   : > { %v975_v29 = vadd.f32 %v949_v35, %v927_v17  ;;  %v4252_v35 = vpop.permute.xlu0 %1066 }
 0x2f7   : > { %1779 = vadd.xlane.f32.xlu1 %v4147_v18  ;;  %v4590_v18 = vsub.f32 %v3789_v50, %v4589_v46  ;;  %v1003_v50 = vld [vmem:[#allocation5] sm:$0xff]  ;;  %v1005_v46 = vld [vmem:[#allocation5 + $0x10] sm:$0xff] }
 0x2f8   : > { %992 = vst.msk [vmem:[#allocation4 + $0x28] sm:$0xff] %vm986_vm5, %v975_v29  ;;  %1789 = vadd.xlane.f32.xlu0 %v4174_v23  ;;  %v4592_v23 = vld [vmem:[#allocation44_spill] sm:$0xff] }
 0x2f9   : > { %v953_v45 = vpop.xlane.xlu1 %952  ;;  %v1603_v16 = vmul.f32 1.442695, %v4590_v18 }
 0x2fa   : > { %v977_v51 = vadd.f32 %v953_v45, %v929_v26  ;;  %v1099_v26 = vmul.f32 %v4060_v55, %v1003_v50 }
 0x2fb   : > { %1783 = vadd.xlane.f32.xlu1 %v4159_v61  ;;  %3003 = vpow2.f32 %v1603_v16  ;;  %v4591_v61 = vld [vmem:[#allocation42_spill] sm:$0xff]  ;;  %v1102_v16 = vmul.f32 %v1037_v8, %v1006_v28 }
 0x2fc   : > { %994 = vst.msk [vmem:[#allocation4 + $0x38] sm:$0xff] %vm986_vm5, %v977_v51  ;;  %1793 = vadd.xlane.f32.xlu0 %v4185_v48  ;;  %v4593_v27 = vsub.f32 %v4591_v61, %v4592_v23  ;;  %v1004_v48 = vld [vmem:[#allocation5 + $0x8] sm:$0xff] }
 0x2fd   : > { %v1100_v17 = vmul.f32 %v1027_v6, %v1004_v48 }
 0x2fe   : > { %v1601_v31 = vmul.f32 1.442695, %v4593_v27  ;;  %v1008_v27 = vld [vmem:[#allocation5 + $0x28] sm:$0xff] }
 0x2ff   : > { %1787 = vadd.xlane.f32.xlu1 %v4171_v9 }
 0x300   : > { %3005 = vpow2.f32 %v1601_v31  ;;  %v935_v31 = vmul.f32 %v4095_v12, %v919_v2 }
 0x303   : > { %1791 = vadd.xlane.f32.xlu1 %v4180_v7  ;;  %v933_v7 = vmul.f32 %v4083_v5, %v917_v13  ;;  %v1101_v5 = vmul.f32 %v4168_v53, %v1005_v46  ;;  %v1007_v13 = vld [vmem:[#allocation5 + $0x20] sm:$0xff] }
 0x304   : > { %v1103_v28 = vmul.f32 %v4182_v30, %v1007_v13  ;;  %v1733_v46 = vld [vmem:[#allocation4] sm:$0xff] }
 0x306   : > { %v957_v1 = vpop.xlane.xlu1 %956 }
 0x307   : > { %v979_v9 = vadd.f32 %v957_v1, %v931_v32  ;;  %1795 = vadd.xlane.f32.xlu1 %v4189_v47  ;;  %v4260_v32 = vpop.permute.xlu0 %1076  ;;  %v921_v1 = vld [vmem:[#allocation4 + $0x78] sm:$0xff] }
 0x308   : > { %v4263_v23 = vpop.eup %3003 }
 0x309   : > { %996 = vst.msk [vmem:[#allocation4 + $0x48] sm:$0xff] %vm986_vm5, %v979_v9  ;;  %v2659_v49 = vpop.f32.mrf.mxu1  ;;  %v1104_v9 = vmul.f32 %v1047_v19, %v1008_v27  ;;  %v1010_v19 = vld [vmem:[#allocation5 + $0x38] sm:$0xff] }
 0x30a   : > { %v961_v29 = vpop.xlane.xlu1 %960  ;;  %v1261_v45 = vadd.f32 %v2659_v49, %v1100_v17  ;;  %v1106_v30 = vmul.f32 %v4244_v10, %v1010_v19 }
 0x30b   : > { %v981_v51 = vadd.f32 %v961_v29, %v933_v7  ;;  %v1181_v18 = vpop.f32.mrf.mxu1  ;;  %v4269_v50 = vpop.permute.xlu0 %1086  ;;  %v937_v7 = vmul.f32 %v4107_v33, %v921_v1  ;;  %v1009_v33 = vld [vmem:[#allocation5 + $0x30] sm:$0xff] }
 0x30c   : > { %1277 = vst.msk [vmem:[#allocation5 + $0x8] sm:$0xff] %vm450_vm2, %v1261_v45  ;;  %v1260_v47 = vadd.f32 %v1181_v18, %v1099_v26 }
 0x30d   : > { %998 = vst.msk [vmem:[#allocation4 + $0x58] sm:$0xff] %vm986_vm5, %v981_v51  ;;  %v2662_v6 = vpop.f32.mrf.mxu1  ;;  %v4274_v29 = vpop.eup %3005 }
 0x30e   : > { %1276 = vst.msk [vmem:[#allocation5] sm:$0xff] %vm450_vm2, %v1260_v47  ;;  %v1263_v61 = vadd.f32 %v2662_v6, %v1102_v16  ;;  %v1749_v47 = vmul.f32 %v4117_v54, %v1733_v46  ;;  %v1105_v6 = vmul.f32 %v4192_v21, %v1009_v33 }
 0x30f   : > { %v1191_v55 = vpop.f32.mrf.mxu1  ;;  %v1097_v18 = vpop.permute.xlu0 %1096 }
 0x310   : > { %1279 = vst.msk [vmem:[#allocation5 + $0x18] sm:$0xff] %vm450_vm2, %v1263_v61  ;;  %v1262_v8 = vadd.f32 %v1191_v55, %v1101_v5 }
 0x312   : > { %v965_v48 = vpop.xlane.xlu1 %964  ;;  %1922 = vperm.xlu0 %2877, %v4263_v23   ;;  %1278 = vst.msk [vmem:[#allocation5 + $0x10] sm:$0xff] %vm450_vm2, %v1262_v8 }
 0x313   : > { %v983_v53 = vadd.f32 %v965_v48, %v935_v31  ;;  %v4284_v8 = vpop.permute.xlu0 %1847  ;;  %v1736_v31 = vld [vmem:[#allocation4 + $0x18] sm:$0xff] }
 0x314   : > { %v1752_v54 = vmul.f32 %v4129_v37, %v1736_v31 }
 0x315   : > { %1000 = vst.msk [vmem:[#allocation4 + $0x68] sm:$0xff] %vm986_vm5, %v983_v53  ;;  %v2665_v17 = vpop.f32.mrf.mxu1 }
 0x316   : > { %v1265_v49 = vadd.f32 %v2665_v17, %v1104_v9  ;;  %v969_v12 = vpop.xlane.xlu1 %968  ;;  %v1012_v9 = vld [vmem:[#allocation5 + $0x48] sm:$0xff]  ;;  %v1011_v17 = vld [vmem:[#allocation5 + $0x40] sm:$0xff] }
 0x317   : > { %v985_v26 = vadd.f32 %v969_v12, %v937_v7  ;;  %v1201_v45 = vpop.f32.mrf.mxu1  ;;  %v4288_v10 = vpop.permute.xlu0 %1862  ;;  %v1108_v7 = vmul.f32 %v4252_v35, %v1012_v9  ;;  %v1107_v12 = vmul.f32 %v4194_v20, %v1011_v17  ;;  %v1017_v9 = vld [vmem:[#allocation5 + $0x70] sm:$0xff] }
 0x318   : > { %1281 = vst.msk [vmem:[#allocation5 + $0x28] sm:$0xff] %vm450_vm2, %v1265_v49  ;;  %v1264_v51 = vadd.f32 %v1201_v45, %v1103_v28  ;;  %1917 = vperm.xlu1 %2878, %v4274_v29   ;;  %v1014_v28 = vld [vmem:[#allocation5 + $0x58] sm:$0xff]  ;;  %v1013_v45 = vld [vmem:[#allocation5 + $0x50] sm:$0xff] }
 0x319   : > { %1002 = vst.msk [vmem:[#allocation4 + $0x78] sm:$0xff] %vm986_vm5, %v985_v26  ;;  %v1110_v19 = vmul.f32 %v4260_v32, %v1014_v28  ;;  %v1015_v32 = vld [vmem:[#allocation5 + $0x60] sm:$0xff] }
 0x31a   : > { %1280 = vst.msk [vmem:[#allocation5 + $0x20] sm:$0xff] %vm450_vm2, %v1264_v51 }
 0x31b   : > { %v4291_v1 = vpop.permute.xlu0 %1872 }
 0x31d   : > { %v2668_v16 = vpop.f32.mrf.mxu1 }
 0x31e   : > { %v1267_v2 = vadd.f32 %v2668_v16, %v1106_v30  ;;  %v1766_v5 = vpop.xlane.xlu1 %1765  ;;  %v1109_v30 = vmul.f32 %v4196_v4, %v1013_v45  ;;  %v908_v4 = vld [vmem:[#allocation4 + $0x10] sm:$0xff] }
 0x31f   : > { %v1797_v61 = vadd.f32 %v1766_v5, %v1749_v47  ;;  %v1211_v55 = vpop.f32.mrf.mxu1  ;;  %v1883_v13 = vpop.permute.xlu0 %1882 }
 0x320   : > { %1283 = vst.msk [vmem:[#allocation5 + $0x38] sm:$0xff] %vm450_vm2, %v1267_v2  ;;  %v1266_v27 = vadd.f32 %v1211_v55, %v1105_v6  ;;  %v907_v6 = vld [vmem:[#allocation4 + $0x8] sm:$0xff] }
 0x321   : > { %1813 = vst.msk [vmem:[#allocation4] sm:$0xff] %vm986_vm5, %v1797_v61  ;;  %v1016_v2 = vld [vmem:[#allocation5 + $0x68] sm:$0xff]  ;;  %v923_v5 = vmul.f32 %v4031_v44, %v907_v6  ;;  %v912_v6 = vld [vmem:[#allocation4 + $0x30] sm:$0xff] }
 0x322   : > { %1282 = vst.msk [vmem:[#allocation5 + $0x30] sm:$0xff] %vm450_vm2, %v1266_v27  ;;  %v1112_v61 = vmul.f32 %v4269_v50, %v1016_v2  ;;  %v1018_v27 = vld [vmem:[#allocation5 + $0x78] sm:$0xff]  ;;  %v910_v50 = vld [vmem:[#allocation4 + $0x20] sm:$0xff] }
 0x323   : > { %v4294_v53 = vpop.permute.xlu0 %1892 }
 0x327   : > { %v4298_v26 = vpop.permute.xlu0 %1902 }
 0x32a   : > { %v1772_v48 = vpop.xlane.xlu1 %1771 }
 0x32b   : > { %v1800_v21 = vadd.f32 %v1772_v48, %v1752_v54  ;;  %v4304_v47 = vpop.permute.xlu0 %1912  ;;  %v1111_v48 = vmul.f32 %v4198_v25, %v1015_v32 }
 0x32d   : > { %1816 = vst.msk [vmem:[#allocation4 + $0x18] sm:$0xff] %vm986_vm5, %v1800_v21 }
 0x33e   : > { %v2671_v49 = vpop.f32.mrf.mxu1 }
 0x33f   : > { %v1269_v37 = vadd.f32 %v2671_v49, %v1108_v7  ;;  %v4594_v7 = vld [vmem:[#allocation46_spill] sm:$0xff]  ;;  %v1114_v49 = vmul.f32 %v1097_v18, %v1018_v27 }
 0x340   : > { %v1221_v51 = vpop.f32.mrf.mxu1  ;;  %v924_v28 = vmul.f32 %v4594_v7, %v908_v4  ;;  %v928_v4 = vmul.f32 %v3888_v34, %v912_v6 }
 0x341   : > { %1285 = vst.msk [vmem:[#allocation5 + $0x48] sm:$0xff] %vm450_vm2, %v1269_v37  ;;  %v1268_v46 = vadd.f32 %v1221_v51, %v1107_v12  ;;  %v1836_v51 = vld [vmem:[#allocation5 + $0x38] sm:$0xff] }
 0x342   : > { %v2674_v33 = vpop.f32.mrf.mxu1 }
 0x343   : > { %1284 = vst.msk [vmem:[#allocation5 + $0x40] sm:$0xff] %vm450_vm2, %v1268_v46  ;;  %v1271_v35 = vadd.f32 %v2674_v33, %v1110_v19  ;;  %v1113_v19 = vmul.f32 %v4200_v11, %v1017_v9  ;;  %v4595_v33 = vld [vmem:[#allocation47_spill] sm:$0xff] }
 0x344   : > { %v1231_v16 = vpop.f32.mrf.mxu1 }
 0x345   : > { %1287 = vst.msk [vmem:[#allocation5 + $0x58] sm:$0xff] %vm450_vm2, %v1271_v35  ;;  %v1270_v20 = vadd.f32 %v1231_v16, %v1109_v30  ;;  %v926_v30 = vmul.f32 %v4595_v33, %v910_v50  ;;  %v1835_v35 = vld [vmem:[#allocation5 + $0x30] sm:$0xff]  ;;  %v1932_v16 = vmul.f32 %v1883_v13, %v1836_v51  ;;  %v1829_v13 = vld [vmem:[#allocation5] sm:$0xff] }
 0x346   : > { %v1925_v7 = vmul.f32 %v4284_v8, %v1829_v13  ;;  %v916_v50 = vld [vmem:[#allocation4 + $0x50] sm:$0xff] }
 0x347   : > { %1286 = vst.msk [vmem:[#allocation5 + $0x50] sm:$0xff] %vm450_vm2, %v1270_v20  ;;  %v932_v8 = vmul.f32 %v3901_v24, %v916_v50 }
 0x348   : > { %v1838_v9 = vld [vmem:[#allocation5 + $0x48] sm:$0xff] }
 0x349   : > { %v941_v55 = vpop.xlane.xlu0 %940 }
 0x34a   : > { %v2677_v31 = vpop.f32.mrf.mxu1  ;;  %v971_v54 = vadd.f32 %v941_v55, %v923_v5  ;;  %v1931_v5 = vmul.f32 %v4214_v52, %v1835_v35  ;;  %v918_v35 = vld [vmem:[#allocation4 + $0x60] sm:$0xff] }
 0x34b   : > { %v1273_v21 = vadd.f32 %v2677_v31, %v1112_v61  ;;  %v1830_v61 = vld [vmem:[#allocation5 + $0x8] sm:$0xff] }
 0x34c   : > { %988 = vst.msk [vmem:[#allocation4 + $0x8] sm:$0xff] %vm986_vm5, %v971_v54  ;;  %v1241_v17 = vpop.f32.mrf.mxu1  ;;  %v914_v54 = vld [vmem:[#allocation4 + $0x40] sm:$0xff]  ;;  %v1840_v51 = vld [vmem:[#allocation5 + $0x58] sm:$0xff] }
 0x34d   : > { %1289 = vst.msk [vmem:[#allocation5 + $0x68] sm:$0xff] %vm450_vm2, %v1273_v21  ;;  %v1272_v44 = vadd.f32 %v1241_v17, %v1111_v48  ;;  %v943_v12 = vpop.xlane.xlu0 %942  ;;  %v1926_v21 = vmul.f32 %v4204_v39, %v1830_v61  ;;  %v930_v34 = vmul.f32 %v3895_v62, %v914_v54 }
 0x34e   : > { %v2680_v37 = vpop.f32.mrf.mxu1  ;;  %v972_v45 = vadd.f32 %v943_v12, %v924_v28  ;;  %v1837_v28 = vld [vmem:[#allocation5 + $0x40] sm:$0xff]  ;;  %v1934_v12 = vmul.f32 %v4294_v53, %v1838_v9 }
 0x34f   : > { %1288 = vst.msk [vmem:[#allocation5 + $0x60] sm:$0xff] %vm450_vm2, %v1272_v44  ;;  %v1275_v25 = vadd.f32 %v2680_v37, %v1114_v49 }
 0x350   : > { %989 = vst.msk [vmem:[#allocation4 + $0x10] sm:$0xff] %vm986_vm5, %v972_v45  ;;  %v1251_v46 = vpop.f32.mrf.mxu1 }
 0x351   : > { %1291 = vst.msk [vmem:[#allocation5 + $0x78] sm:$0xff] %vm450_vm2, %v1275_v25  ;;  %v1274_v18 = vadd.f32 %v1251_v46, %v1113_v19  ;;  %v947_v20 = vpop.xlane.xlu0 %946  ;;  %v1933_v25 = vmul.f32 %v4218_v40, %v1837_v28  ;;  %v1839_v46 = vld [vmem:[#allocation5 + $0x50] sm:$0xff] }
 0x352   : > { %v2756_v2 = vpop.f32.mrf.mxu1  ;;  %v974_v32 = vadd.f32 %v947_v20, %v926_v30  ;;  %v1936_v30 = vmul.f32 %v4298_v26, %v1840_v51  ;;  %v1832_v20 = vld [vmem:[#allocation5 + $0x18] sm:$0xff] }
 0x353   : > { %1290 = vst.msk [vmem:[#allocation5 + $0x70] sm:$0xff] %vm450_vm2, %v1274_v18  ;;  %v2093_v11 = vadd.f32 %v2756_v2, %v1932_v16  ;;  %v1935_v2 = vmul.f32 %v4221_v15, %v1839_v46  ;;  %v1928_v61 = vmul.f32 %v4288_v10, %v1832_v20  ;;  %v1738_v46 = vld [vmem:[#allocation4 + $0x28] sm:$0xff] }
 0x354   : > { %991 = vst.msk [vmem:[#allocation4 + $0x20] sm:$0xff] %vm986_vm5, %v974_v32  ;;  %v2037_v55 = vpop.f32.mrf.mxu1  ;;  %v1842_v6 = vld [vmem:[#allocation5 + $0x68] sm:$0xff]  ;;  %v934_v32 = vmul.f32 %v3906_v56, %v918_v35 }
 0x355   : > { %2109 = vst.msk [vmem:[#allocation5 + $0x38] sm:$0xff] %vm450_vm2, %v2093_v11  ;;  %v2092_v27 = vadd.f32 %v2037_v55, %v1931_v5  ;;  %v951_v31 = vpop.xlane.xlu0 %950  ;;  %v1831_v11 = vld [vmem:[#allocation5 + $0x10] sm:$0xff] }
 0x356   : > { %v976_v48 = vadd.f32 %v951_v31, %v928_v4  ;;  %v1841_v5 = vld [vmem:[#allocation5 + $0x60] sm:$0xff]  ;;  %v1938_v4 = vmul.f32 %v4304_v47, %v1842_v6  ;;  %v1927_v56 = vmul.f32 %v4207_v43, %v1831_v11 }
 0x357   : > { %2108 = vst.msk [vmem:[#allocation5 + $0x30] sm:$0xff] %vm450_vm2, %v2092_v27  ;;  %v2747_v17 = vpop.f32.mrf.mxu0  ;;  %v920_v27 = vld [vmem:[#allocation4 + $0x70] sm:$0xff] }
 0x358   : > { %993 = vst.msk [vmem:[#allocation4 + $0x30] sm:$0xff] %vm986_vm5, %v976_v48  ;;  %v2087_v52 = vadd.f32 %v2747_v17, %v1926_v21  ;;  %v1937_v21 = vmul.f32 %v4223_v41, %v1841_v5  ;;  %v936_v10 = vmul.f32 %v3911_v63, %v920_v27 }
 0x359   : > { %v2007_v49 = vpop.f32.mrf.mxu0  ;;  %v955_v44 = vpop.xlane.xlu0 %954 }
 0x35a   : > { %2103 = vst.msk [vmem:[#allocation5 + $0x8] sm:$0xff] %vm450_vm2, %v2087_v52  ;;  %v2086_v39 = vadd.f32 %v2007_v49, %v1925_v7  ;;  %v978_v37 = vadd.f32 %v955_v44, %v930_v34  ;;  %v2759_v45 = vpop.f32.mrf.mxu1  ;;  %v1734_v34 = vld [vmem:[#allocation4 + $0x8] sm:$0xff]  ;;  %v1735_v49 = vld [vmem:[#allocation4 + $0x10] sm:$0xff] }
 0x35b   : > { %v2095_v19 = vadd.f32 %v2759_v45, %v1934_v12  ;;  %v1750_v43 = vmul.f32 %v3918_v38, %v1734_v34  ;;  %v1751_v44 = vmul.f32 %v3923_v58, %v1735_v49  ;;  %v1737_v50 = vld [vmem:[#allocation4 + $0x20] sm:$0xff] }
 0x35c   : > { %2102 = vst.msk [vmem:[#allocation5] sm:$0xff] %vm450_vm2, %v2086_v39  ;;  %v2047_v62 = vpop.f32.mrf.mxu1 }
 0x35d   : > { %995 = vst.msk [vmem:[#allocation4 + $0x40] sm:$0xff] %vm986_vm5, %v978_v37  ;;  %v2094_v53 = vadd.f32 %v2047_v62, %v1933_v25  ;;  %v959_v33 = vpop.xlane.xlu0 %958  ;;  %v1753_v37 = vmul.f32 %v3926_v42, %v1737_v50  ;;  %v1754_v42 = vmul.f32 %v4144_v22, %v1738_v46  ;;  %v1742_v22 = vld [vmem:[#allocation4 + $0x48] sm:$0xff] }
 0x35e   : > { %2111 = vst.msk [vmem:[#allocation5 + $0x48] sm:$0xff] %vm450_vm2, %v2095_v19  ;;  %v980_v18 = vadd.f32 %v959_v33, %v932_v8  ;;  %v2762_v16 = vpop.f32.mrf.mxu1 }
 0x35f   : > { %2110 = vst.msk [vmem:[#allocation5 + $0x40] sm:$0xff] %vm450_vm2, %v2094_v53  ;;  %v2097_v40 = vadd.f32 %v2762_v16, %v1936_v30  ;;  %v1739_v51 = vld [vmem:[#allocation4 + $0x30] sm:$0xff]  ;;  %v1740_v16 = vld [vmem:[#allocation4 + $0x38] sm:$0xff] }
 0x360   : > { %997 = vst.msk [vmem:[#allocation4 + $0x50] sm:$0xff] %vm986_vm5, %v980_v18  ;;  %v2057_v24 = vpop.f32.mrf.mxu1  ;;  %v1755_v38 = vmul.f32 %v3929_v60, %v1739_v51 }
 0x361   : > { %2113 = vst.msk [vmem:[#allocation5 + $0x58] sm:$0xff] %vm450_vm2, %v2097_v40  ;;  %v2096_v26 = vadd.f32 %v2057_v24, %v1935_v2  ;;  %v963_v55 = vpop.xlane.xlu0 %962 }
 0x362   : > { %v2750_v31 = vpop.f32.mrf.mxu0  ;;  %v982_v13 = vadd.f32 %v963_v55, %v934_v32  ;;  %v2765_v54 = vpop.f32.mrf.mxu1 }
 0x363   : > { %2112 = vst.msk [vmem:[#allocation5 + $0x50] sm:$0xff] %vm450_vm2, %v2096_v26  ;;  %v2089_v15 = vadd.f32 %v2750_v31, %v1928_v61  ;;  %v2099_v48 = vadd.f32 %v2765_v54, %v1938_v4  ;;  %v1746_v54 = vld [vmem:[#allocation4 + $0x68] sm:$0xff] }
 0x364   : > { %999 = vst.msk [vmem:[#allocation4 + $0x60] sm:$0xff] %vm986_vm5, %v982_v13  ;;  %v2017_v9 = vpop.f32.mrf.mxu0  ;;  %v2067_v17 = vpop.f32.mrf.mxu1  ;;  %v1741_v62 = vld [vmem:[#allocation4 + $0x40] sm:$0xff] }
 0x365   : > { %2105 = vst.msk [vmem:[#allocation5 + $0x18] sm:$0xff] %vm450_vm2, %v2089_v15  ;;  %2115 = vst.msk [vmem:[#allocation5 + $0x68] sm:$0xff] %vm450_vm2, %v2099_v48  ;;  %v2088_v47 = vadd.f32 %v2017_v9, %v1927_v56  ;;  %v2098_v52 = vadd.f32 %v2067_v17, %v1937_v21  ;;  %v967_v7 = vpop.xlane.xlu0 %966  ;;  %v1757_v58 = vmul.f32 %v3934_v57, %v1741_v62  ;;  %v1748_v21 = vld [vmem:[#allocation4 + $0x78] sm:$0xff] }
 0x366   : > { %v984_v28 = vadd.f32 %v967_v7, %v936_v10  ;;  %v1756_v57 = vmul.f32 %v4151_v0, %v1740_v16  ;;  %v1744_v0 = vld [vmem:[#allocation4 + $0x58] sm:$0xff] }
 0x367   : > { %2104 = vst.msk [vmem:[#allocation5 + $0x10] sm:$0xff] %vm450_vm2, %v2088_v47  ;;  %2114 = vst.msk [vmem:[#allocation5 + $0x60] sm:$0xff] %vm450_vm2, %v2098_v52  ;;  %v1743_v33 = vld [vmem:[#allocation4 + $0x50] sm:$0xff]  ;;  %v1844_v9 = vld [vmem:[#allocation5 + $0x78] sm:$0xff]  ;;  %v2768_v47 = vpop.f32.mrf.mxu1 }
 0x368   : > { %1001 = vst.msk [vmem:[#allocation4 + $0x70] sm:$0xff] %vm986_vm5, %v984_v28  ;;  %v1759_v18 = vmul.f32 %v3939_v3, %v1743_v33  ;;  %v1758_v3 = vmul.f32 %v4155_v59, %v1742_v22  ;;  %v4596_v59 = vld [vmem:[#allocation29_spill] sm:$0xff] }
 0x369   : > { %v1768_v41 = vpop.xlane.xlu0 %1767  ;;  %v1762_v48 = vmul.f32 %v4596_v59, %v1746_v54  ;;  %v1843_v28 = vld [vmem:[#allocation5 + $0x70] sm:$0xff]  ;;  %v2077_v49 = vpop.f32.mrf.mxu1 }
 0x36a   : > { %v1798_v63 = vadd.f32 %v1768_v41, %v1750_v43 }
 0x36b   : > { %v1745_v6 = vld [vmem:[#allocation4 + $0x60] sm:$0xff] }
 0x36c   : > { %1814 = vst.msk [vmem:[#allocation4 + $0x8] sm:$0xff] %vm986_vm5, %v1798_v63  ;;  %v1761_v24 = vmul.f32 %v3942_v36, %v1745_v6  ;;  %v1760_v36 = vmul.f32 %v4166_v14, %v1744_v0  ;;  %v1764_v14 = vmul.f32 %v4263_v23, %v1748_v21 }
 0x36d   : > { %v1770_v12 = vpop.xlane.xlu0 %1769 }
 0x36e   : > { %v1799_v39 = vadd.f32 %v1770_v12, %v1751_v44  ;;  %v1834_v44 = vld [vmem:[#allocation5 + $0x28] sm:$0xff]  ;;  %v1833_v12 = vld [vmem:[#allocation5 + $0x20] sm:$0xff] }
 0x36f   : > { %v1747_v5 = vld [vmem:[#allocation4 + $0x70] sm:$0xff]  ;;  %v1930_v50 = vmul.f32 %v4291_v1, %v1834_v44 }
 0x370   : > { %1815 = vst.msk [vmem:[#allocation4 + $0x10] sm:$0xff] %vm986_vm5, %v1799_v39  ;;  %v1763_v55 = vmul.f32 %v4274_v29, %v1747_v5 }
 0x371   : > { %v1774_v45 = vpop.xlane.xlu0 %1773 }
 0x372   : > { %v1801_v19 = vadd.f32 %v1774_v45, %v1753_v37  ;;  %v4597_v37 = vld [vmem:[#allocation30_spill] sm:$0xff] }
 0x373   : > { %v1929_v45 = vmul.f32 %v4597_v37, %v1833_v12 }
 0x374   : > { %1817 = vst.msk [vmem:[#allocation4 + $0x20] sm:$0xff] %vm986_vm5, %v1801_v19 }
 0x375   : > { %v1778_v25 = vpop.xlane.xlu0 %1777 }
 0x376   : > { %v1803_v8 = vadd.f32 %v1778_v25, %v1755_v38 }
 0x378   : > { %1819 = vst.msk [vmem:[#allocation4 + $0x30] sm:$0xff] %vm986_vm5, %v1803_v8 }
 0x379   : > { %v1782_v53 = vpop.xlane.xlu0 %1781 }
 0x37a   : > { %v1805_v30 = vadd.f32 %v1782_v53, %v1757_v58 }
 0x37c   : > { %1821 = vst.msk [vmem:[#allocation4 + $0x40] sm:$0xff] %vm986_vm5, %v1805_v30  ;;  %v1776_v35 = vpop.xlane.xlu1 %1775 }
 0x37d   : > { %v1802_v60 = vadd.f32 %v1776_v35, %v1754_v42  ;;  %v1786_v20 = vpop.xlane.xlu0 %1785 }
 0x37e   : > { %v1807_v40 = vadd.f32 %v1786_v20, %v1759_v18 }
 0x37f   : > { %1818 = vst.msk [vmem:[#allocation4 + $0x28] sm:$0xff] %vm986_vm5, %v1802_v60 }
 0x380   : > { %1823 = vst.msk [vmem:[#allocation4 + $0x50] sm:$0xff] %vm986_vm5, %v1807_v40  ;;  %v1780_v2 = vpop.xlane.xlu1 %1779 }
 0x381   : > { %v1804_v32 = vadd.f32 %v1780_v2, %v1756_v57  ;;  %v1790_v11 = vpop.xlane.xlu0 %1789 }
 0x382   : > { %v1809_v26 = vadd.f32 %v1790_v11, %v1761_v24 }
 0x383   : > { %1820 = vst.msk [vmem:[#allocation4 + $0x38] sm:$0xff] %vm986_vm5, %v1804_v32 }
 0x384   : > { %1825 = vst.msk [vmem:[#allocation4 + $0x60] sm:$0xff] %vm986_vm5, %v1809_v26  ;;  %v1784_v61 = vpop.xlane.xlu1 %1783 }
 0x385   : > { %v1806_v4 = vadd.f32 %v1784_v61, %v1758_v3  ;;  %v1794_v27 = vpop.xlane.xlu0 %1793 }
 0x386   : > { %v1811_v31 = vadd.f32 %v1794_v27, %v1763_v55 }
 0x387   : > { %1822 = vst.msk [vmem:[#allocation4 + $0x48] sm:$0xff] %vm986_vm5, %v1806_v4 }
 0x388   : > { %1827 = vst.msk [vmem:[#allocation4 + $0x70] sm:$0xff] %vm986_vm5, %v1811_v31  ;;  %v1788_v13 = vpop.xlane.xlu1 %1787 }
 0x389   : > { %v1808_v15 = vadd.f32 %v1788_v13, %v1760_v36 }
 0x38b   : > { %1824 = vst.msk [vmem:[#allocation4 + $0x58] sm:$0xff] %vm986_vm5, %v1808_v15 }
 0x38c   : > { %v1792_v56 = vpop.xlane.xlu1 %1791 }
 0x38d   : > { %v1810_v29 = vadd.f32 %v1792_v56, %v1762_v48  ;;  %v1923_v17 = vpop.permute.xlu0 %1922 }
 0x38e   : > { %v1940_v10 = vmul.f32 %v1923_v17, %v1844_v9 }
 0x38f   : > { %1826 = vst.msk [vmem:[#allocation4 + $0x68] sm:$0xff] %vm986_vm5, %v1810_v29 }
 0x390   : > { %v2101_v52 = vadd.f32 %v2768_v47, %v1940_v10  ;;  %v1796_v7 = vpop.xlane.xlu1 %1795 }
 0x391   : > { %v1812_v34 = vadd.f32 %v1796_v7, %v1764_v14 }
 0x392   : > { %2117 = vst.msk [vmem:[#allocation5 + $0x78] sm:$0xff] %vm450_vm2, %v2101_v52 }
 0x393   : > { %1828 = vst.msk [vmem:[#allocation4 + $0x78] sm:$0xff] %vm986_vm5, %v1812_v34 }
 0x394   : > { %v1918_v43 = vpop.permute.xlu1 %1917 }
 0x395   : > { %v1939_v41 = vmul.f32 %v1918_v43, %v1843_v28 }
 0x397   : > { %v2100_v63 = vadd.f32 %v2077_v49, %v1939_v41 }
 0x399   : > { %2116 = vst.msk [vmem:[#allocation5 + $0x70] sm:$0xff] %vm450_vm2, %v2100_v63 }
 0x3b3   : > { %v2753_v39 = vpop.f32.mrf.mxu0 }
 0x3b4   : > { %v2091_v23 = vadd.f32 %v2753_v39, %v1930_v50  ;;  %2137 = sbr.rel (%p2486_p1) target bundleno = 1124 (0x464), region = 63 }
 0x3b5   : > { %v2027_v51 = vpop.f32.mrf.mxu0 }
 0x3b6   : > { %2107 = vst.msk [vmem:[#allocation5 + $0x28] sm:$0xff] %vm450_vm2, %v2091_v23  ;;  %v2090_v19 = vadd.f32 %v2027_v51, %v1929_v45 }
 0x3b8   : > { %2106 = vst.msk [vmem:[#allocation5 + $0x20] sm:$0xff] %vm450_vm2, %v2090_v19 }
 0x3b9   : > { %v2140_v38 = vld [vmem:[#allocation4 + $0x10] sm:$0xff]  ;;  %v2138_v25 = vld [vmem:[#allocation4] sm:$0xff]  ;;  %v2141_v62 = vld [vmem:[#allocation4 + $0x18] sm:$0xff]  ;;  %v3116_v8 = vmov 0  }
 0x3ba   : > { %3008 = vset.pattern.permute.xlu1 %v3116_v8  ;;  %3007 = vset.pattern.permute.xlu0 %v3116_v8  ;;  %3009 = vrcp.f32 %v2140_v38  ;;  %v2139_v1 = vld [vmem:[#allocation4 + $0x8] sm:$0xff]  ;;  %v2142_v46 = vld [vmem:[#allocation4 + $0x20] sm:$0xff]  ;;  %v2145_v53 = vld [vmem:[#allocation4 + $0x38] sm:$0xff] }
 0x3bb   : > { %3011 = vrcp.f32 %v2138_v25  ;;  %v2143_v58 = vld [vmem:[#allocation4 + $0x28] sm:$0xff]  ;;  %v2144_v33 = vld [vmem:[#allocation4 + $0x30] sm:$0xff]  ;;  %v2146_v42 = vld [vmem:[#allocation4 + $0x40] sm:$0xff] }
 0x3bc   : > { %3013 = vrcp.f32 %v2141_v62  ;;  %v2147_v30 = vld [vmem:[#allocation4 + $0x48] sm:$0xff]  ;;  %v2149_v60 = vld [vmem:[#allocation4 + $0x58] sm:$0xff]  ;;  %v2148_v6 = vld [vmem:[#allocation4 + $0x50] sm:$0xff] }
 0x3bd   : > { %3015 = vrcp.f32 %v2139_v1  ;;  %v2151_v57 = vld [vmem:[#allocation4 + $0x68] sm:$0xff]  ;;  %v2150_v24 = vld [vmem:[#allocation4 + $0x60] sm:$0xff]  ;;  %v2153_v32 = vld [vmem:[#allocation4 + $0x78] sm:$0xff] }
 0x3be   : > { %3017 = vrcp.f32 %v2143_v58  ;;  %v2152_v5 = vld [vmem:[#allocation4 + $0x70] sm:$0xff]  ;;  %v2170_v13 = vld [vmem:[#allocation5] sm:$0xff]  ;;  %v2173_v56 = vld [vmem:[#allocation5 + $0x18] sm:$0xff] }
 0x3bf   : > { %3019 = vrcp.f32 %v2142_v46  ;;  %v2172_v36 = vld [vmem:[#allocation5 + $0x10] sm:$0xff]  ;;  %v2171_v21 = vld [vmem:[#allocation5 + $0x8] sm:$0xff]  ;;  %v2174_v14 = vld [vmem:[#allocation5 + $0x20] sm:$0xff] }
 0x3c0   : > { %3021 = vrcp.f32 %v2145_v53  ;;  %v2175_v47 = vld [vmem:[#allocation5 + $0x28] sm:$0xff]  ;;  %v2177_v43 = vld [vmem:[#allocation5 + $0x38] sm:$0xff]  ;;  %v2176_v41 = vld [vmem:[#allocation5 + $0x30] sm:$0xff] }
 0x3c1   : > { %3023 = vrcp.f32 %v2144_v33  ;;  %v2179_v50 = vld [vmem:[#allocation5 + $0x48] sm:$0xff]  ;;  %v2178_v39 = vld [vmem:[#allocation5 + $0x40] sm:$0xff]  ;;  %v2181_v19 = vld [vmem:[#allocation5 + $0x58] sm:$0xff] }
 0x3c2   : > { %3025 = vrcp.f32 %v2147_v30  ;;  %v2180_v38 = vld [vmem:[#allocation5 + $0x50] sm:$0xff]  ;;  %v2183_v58 = vld [vmem:[#allocation5 + $0x68] sm:$0xff]  ;;  %v2182_v46 = vld [vmem:[#allocation5 + $0x60] sm:$0xff] }
 0x3c3   : > { %3027 = vrcp.f32 %v2146_v42 }
 0x3c4   : > { %3029 = vrcp.f32 %v2149_v60 }
 0x3c5   : > { %3031 = vrcp.f32 %v2148_v6 }
 0x3c6   : > { %3033 = vrcp.f32 %v2151_v57 }
 0x3c7   : > { %v3010_v35 = vpop.eup %3009  ;;  %3035 = vrcp.f32 %v2150_v24 }
 0x3c8   : > { %v3012_v18 = vpop.eup %3011  ;;  %2198 = vperm.xlu1 %3008, %v3010_v35   ;;  %3037 = vrcp.f32 %v2153_v32  ;;  %v2185_v35 = vld [vmem:[#allocation5 + $0x78] sm:$0xff] }
 0x3c9   : > { %v3014_v16 = vpop.eup %3013  ;;  %2188 = vperm.xlu0 %3007, %v3012_v18   ;;  %3039 = vrcp.f32 %v2152_v5  ;;  %v2184_v18 = vld [vmem:[#allocation5 + $0x70] sm:$0xff] }
 0x3ca   : > { %v3016_v20 = vpop.eup %3015 }
 0x3cb   : > { %v3018_v40 = vpop.eup %3017 }
 0x3cc   : > { %2203 = vperm.xlu1 %3008, %v3014_v16   ;;  %v3020_v2 = vpop.eup %3019 }
 0x3cd   : > { %2193 = vperm.xlu0 %3007, %v3016_v20   ;;  %v3022_v22 = vpop.eup %3021 }
 0x3ce   : > { %v3024_v11 = vpop.eup %3023 }
 0x3cf   : > { %v3026_v26 = vpop.eup %3025 }
 0x3d0   : > { %2213 = vperm.xlu1 %3008, %v3018_v40   ;;  %v3028_v3 = vpop.eup %3027 }
 0x3d1   : > { %2208 = vperm.xlu0 %3007, %v3020_v2   ;;  %v3030_v61 = vpop.eup %3029 }
 0x3d2   : > { %v3032_v55 = vpop.eup %3031 }
 0x3d3   : > { %v3034_v0 = vpop.eup %3033 }
 0x3d4   : > { %2223 = vperm.xlu1 %3008, %v3022_v22   ;;  %v3036_v4 = vpop.eup %3035 }
 0x3d5   : > { %2218 = vperm.xlu0 %3007, %v3024_v11   ;;  %v3038_v27 = vpop.eup %3037 }
 0x3d6   : > { %v3040_v31 = vpop.eup %3039 }
 0x3d8   : > { %2233 = vperm.xlu1 %3008, %v3026_v26  }
 0x3d9   : > { %2228 = vperm.xlu0 %3007, %v3028_v3  }
 0x3dc   : > { %2243 = vperm.xlu1 %3008, %v3030_v61  }
 0x3dd   : > { %2238 = vperm.xlu0 %3007, %v3032_v55  }
 0x3e0   : > { %2253 = vperm.xlu1 %3008, %v3034_v0  }
 0x3e1   : > { %2248 = vperm.xlu0 %3007, %v3036_v4  }
 0x3e4   : > { %2263 = vperm.xlu1 %3008, %v3038_v27  }
 0x3e5   : > { %2258 = vperm.xlu0 %3007, %v3040_v31  }
 0x443   : > { %v2199_v54 = vpop.permute.xlu1 %2198 }
 0x444   : > { %v2268_v15 = vmul.f32 %v2199_v54, %v2172_v36  ;;  %v2189_v59 = vpop.permute.xlu0 %2188 }
 0x445   : > { %v2266_v48 = vmul.f32 %v2189_v59, %v2170_v13 }
 0x446   : > { %2284 = vst.msk [vmem:[%s3226_s12 + $0x10] sm:$0xff] %vm450_vm2, %v2268_v15 }
 0x447   : > { %2282 = vst.msk [vmem:[%s3226_s12] sm:$0xff] %vm450_vm2, %v2266_v48  ;;  %v2204_v29 = vpop.permute.xlu1 %2203 }
 0x448   : > { %v2269_v9 = vmul.f32 %v2204_v29, %v2173_v56  ;;  %v2194_v17 = vpop.permute.xlu0 %2193 }
 0x449   : > { %v2267_v10 = vmul.f32 %v2194_v17, %v2171_v21 }
 0x44a   : > { %2285 = vst.msk [vmem:[%s3226_s12 + $0x18] sm:$0xff] %vm450_vm2, %v2269_v9 }
 0x44b   : > { %2283 = vst.msk [vmem:[%s3226_s12 + $0x8] sm:$0xff] %vm450_vm2, %v2267_v10  ;;  %v2214_v52 = vpop.permute.xlu1 %2213 }
 0x44c   : > { %v2271_v7 = vmul.f32 %v2214_v52, %v2175_v47  ;;  %v2209_v34 = vpop.permute.xlu0 %2208 }
 0x44d   : > { %v2270_v28 = vmul.f32 %v2209_v34, %v2174_v14 }
 0x44e   : > { %2287 = vst.msk [vmem:[%s3226_s12 + $0x28] sm:$0xff] %vm450_vm2, %v2271_v7 }
 0x44f   : > { %2286 = vst.msk [vmem:[%s3226_s12 + $0x20] sm:$0xff] %vm450_vm2, %v2270_v28  ;;  %v2224_v49 = vpop.permute.xlu1 %2223 }
 0x450   : > { %v2273_v63 = vmul.f32 %v2224_v49, %v2177_v43  ;;  %v2219_v44 = vpop.permute.xlu0 %2218 }
 0x451   : > { %v2272_v12 = vmul.f32 %v2219_v44, %v2176_v41 }
 0x452   : > { %2289 = vst.msk [vmem:[%s3226_s12 + $0x38] sm:$0xff] %vm450_vm2, %v2273_v63 }
 0x453   : > { %2288 = vst.msk [vmem:[%s3226_s12 + $0x30] sm:$0xff] %vm450_vm2, %v2272_v12  ;;  %v2234_v23 = vpop.permute.xlu1 %2233 }
 0x454   : > { %v2275_v37 = vmul.f32 %v2234_v23, %v2179_v50  ;;  %v2229_v45 = vpop.permute.xlu0 %2228 }
 0x455   : > { %v2274_v51 = vmul.f32 %v2229_v45, %v2178_v39 }
 0x456   : > { %2291 = vst.msk [vmem:[%s3226_s12 + $0x48] sm:$0xff] %vm450_vm2, %v2275_v37 }
 0x457   : > { %2290 = vst.msk [vmem:[%s3226_s12 + $0x40] sm:$0xff] %vm450_vm2, %v2274_v51  ;;  %v2244_v25 = vpop.permute.xlu1 %2243 }
 0x458   : > { %v2277_v62 = vmul.f32 %v2244_v25, %v2181_v19  ;;  %v2239_v8 = vpop.permute.xlu0 %2238 }
 0x459   : > { %v2276_v1 = vmul.f32 %v2239_v8, %v2180_v38 }
 0x45a   : > { %2293 = vst.msk [vmem:[%s3226_s12 + $0x58] sm:$0xff] %vm450_vm2, %v2277_v62 }
 0x45b   : > { %2292 = vst.msk [vmem:[%s3226_s12 + $0x50] sm:$0xff] %vm450_vm2, %v2276_v1  ;;  %v2254_v53 = vpop.permute.xlu1 %2253 }
 0x45c   : > { %v2279_v33 = vmul.f32 %v2254_v53, %v2183_v58  ;;  %v2249_v30 = vpop.permute.xlu0 %2248 }
 0x45d   : > { %v2278_v42 = vmul.f32 %v2249_v30, %v2182_v46 }
 0x45e   : > { %2295 = vst.msk [vmem:[%s3226_s12 + $0x68] sm:$0xff] %vm450_vm2, %v2279_v33 }
 0x45f   : > { %2294 = vst.msk [vmem:[%s3226_s12 + $0x60] sm:$0xff] %vm450_vm2, %v2278_v42  ;;  %v2264_v16 = vpop.permute.xlu1 %2263 }
 0x460   : > { %v2281_v60 = vmul.f32 %v2264_v16, %v2185_v35  ;;  %v2259_v20 = vpop.permute.xlu0 %2258 }
 0x461   : > { %v2280_v6 = vmul.f32 %v2259_v20, %v2184_v18 }
 0x462   : > { %2297 = vst.msk [vmem:[%s3226_s12 + $0x78] sm:$0xff] %vm450_vm2, %v2281_v60 }
 0x463   : > { %2296 = vst.msk [vmem:[%s3226_s12 + $0x70] sm:$0xff] %vm450_vm2, %v2280_v6 }
 0x464 PF: > { %s13_s20 = sadd.s32 1, %s3111_s20   ;;  %s4598_s12 = smov %s3083_s13 }
 0x465   : > { %p10_p2 = scmp.ge.s32.totalorder %s13_s20, 10   ;;  %s4599_s13 = smov %s3202_s28 }
 0x466   : > { %s4600_s14 = smov %s3099_s17  ;;  %s4601_s15 = smov %s3103_s18 }
 0x467   : > { %s4602_s16 = smov %s3107_s19  ;;  %s4603_s17 = smov %s4607_s21 }
 0x468   : > { %s4604_s18 = smov %s4611_s22  ;;  %s4605_s19 = smov %s4615_s23 }
 0x469   :  { %12 = sbr.rel (!%p10_p2) target bundleno = 7 (0x7), region = 104 }

</bundles_post_ra>
